<compile_context>
chip_gen: v5e
topology: v5e:2x2
jax: 0.10.0
libtpu: 0.0.40
codegen_flags: <defaults>
</compile_context>

<pallas_src>
import jax
import jax.numpy as jnp
from jax.experimental import pallas as pl
from jax.experimental.pallas import tpu as pltpu

INPUT_SIZE = 794
HIDDEN_SIZE = 500
NUM_CLASSES = 10

# Lane/sublane-friendly padded dims (multiples of 128 on the lane axis).
IN_PAD = 896     # 7 * 128  >= 794
HID_PAD = 512    # 4 * 128  >= 500
OUT_PAD = 128    # 1 * 128  >= 10  -> unmasked lane-dense vst on the output


def _round_up(n, m):
    return (n + m - 1) // m * m


def mlp_kernel(x_ref, w1_ref, b1_ref, w2_ref, b2_ref, o_ref):
    # fc1: (TB, IN_PAD) @ (IN_PAD, HID_PAD); bf16 MXU inputs, f32 accumulation.
    x = x_ref[...].astype(jnp.bfloat16)
    h = jnp.dot(x, w1_ref[...], preferred_element_type=jnp.float32)
    # bias + ReLU on the VPU (free under the MXU slot).
    h = jnp.maximum(h + b1_ref[...], 0.0)
    # fc2: (TB, HID_PAD) @ (HID_PAD, OUT_PAD)
    out = jnp.dot(h.astype(jnp.bfloat16), w2_ref[...],
                  preferred_element_type=jnp.float32)
    o_ref[...] = (out + b2_ref[...]).astype(o_ref.dtype)


def neural_net_forward(x, w1, b1, w2, b2, *, block_b=1024):
    """x: (B, INPUT_SIZE) f32.
    w1: (IN_PAD, HID_PAD) bf16, b1: (1, HID_PAD) f32,
    w2: (HID_PAD, OUT_PAD) bf16, b2: (1, OUT_PAD) f32 (zero-padded).
    Returns (B, NUM_CLASSES) f32."""
    B = x.shape[0]

    # Batch tile: multiple of 8 (f32 sublane), capped for v7x's smaller VMEM.
    tb = min(block_b, _round_up(B, 8))
    Bp = _round_up(B, tb)

    # Zero-pad activations (batch -> Bp, features -> IN_PAD).
    x_p = jnp.zeros((Bp, IN_PAD), jnp.float32).at[:B, :INPUT_SIZE].set(x)

    grid = (Bp // tb,)

    flops = 2 * Bp * (IN_PAD * HID_PAD + HID_PAD * OUT_PAD)
    bytes_accessed = (x_p.size * 4 + w1.size * 2 + w2.size * 2
                      + b1.size * 4 + b2.size * 4 + Bp * OUT_PAD * 4)

    out_p = pl.pallas_call(
        mlp_kernel,
        out_shape=jax.ShapeDtypeStruct((Bp, OUT_PAD), jnp.float32),
        grid=grid,
        in_specs=[
            pl.BlockSpec((tb, IN_PAD), lambda i: (i, 0)),        # x: tiled over batch
            pl.BlockSpec((IN_PAD, HID_PAD), lambda i: (0, 0)),   # w1: resident
            pl.BlockSpec((1, HID_PAD), lambda i: (0, 0)),        # b1: resident
            pl.BlockSpec((HID_PAD, OUT_PAD), lambda i: (0, 0)),  # w2: resident
            pl.BlockSpec((1, OUT_PAD), lambda i: (0, 0)),        # b2: resident
        ],
        out_specs=pl.BlockSpec((tb, OUT_PAD), lambda i: (i, 0)),
        compiler_params=pltpu.CompilerParams(
            dimension_semantics=("parallel",)),
        cost_estimate=pl.CostEstimate(
            flops=flops, transcendentals=0, bytes_accessed=bytes_accessed),
    )(x_p, w1, b1, w2, b2)

    # Slice off batch padding and the padded logit columns.
    return out_p[:B, :NUM_CLASSES]


def init_params(key):
    """Deterministic init mimicking PyTorch nn.Linear (uniform +-1/sqrt(fan_in)).
    Returns ((padded bf16/f32 kernel params), (unpadded f32 reference params))."""
    k1, k2, k3, k4 = jax.random.split(key, 4)
    bound1 = 1.0 / (INPUT_SIZE ** 0.5)
    bound2 = 1.0 / (HIDDEN_SIZE ** 0.5)
    # stored as (in_features, out_features), i.e. PyTorch weight transposed
    w1 = jax.random.uniform(k1, (INPUT_SIZE, HIDDEN_SIZE), jnp.float32, -bound1, bound1)
    b1 = jax.random.uniform(k2, (HIDDEN_SIZE,), jnp.float32, -bound1, bound1)
    w2 = jax.random.uniform(k3, (HIDDEN_SIZE, NUM_CLASSES), jnp.float32, -bound2, bound2)
    b2 = jax.random.uniform(k4, (NUM_CLASSES,), jnp.float32, -bound2, bound2)

    # Pad once at init (not per call).  Padded rows/cols are zero so they never
    # perturb the real logits; output cols 10..127 are sliced off after the kernel.
    w1_p = jnp.zeros((IN_PAD, HID_PAD), jnp.bfloat16)
    w1_p = w1_p.at[:INPUT_SIZE, :HIDDEN_SIZE].set(w1.astype(jnp.bfloat16))
    b1_p = jnp.zeros((1, HID_PAD), jnp.float32).at[0, :HIDDEN_SIZE].set(b1)
    w2_p = jnp.zeros((HID_PAD, OUT_PAD), jnp.bfloat16)
    w2_p = w2_p.at[:HIDDEN_SIZE, :NUM_CLASSES].set(w2.astype(jnp.bfloat16))
    b2_p = jnp.zeros((1, OUT_PAD), jnp.float32).at[0, :NUM_CLASSES].set(b2)
    return (w1_p, b1_p, w2_p, b2_p), (w1, b1, w2, b2)


if __name__ == "__main__":
    key = jax.random.PRNGKey(0)
    k_params, k_x = jax.random.split(key)
    (w1_p, b1_p, w2_p, b2_p), (w1, b1, w2, b2) = init_params(k_params)

    batch = 8
    x = jax.random.normal(k_x, (batch, INPUT_SIZE), jnp.float32)

    out = neural_net_forward(x, w1_p, b1_p, w2_p, b2_p)
    out = jax.block_until_ready(out)
    assert out.shape == (batch, NUM_CLASSES)

    # Reference 1: identical bf16-input / f32-accumulate math as the kernel.
    x_pad = jnp.zeros((batch, IN_PAD), jnp.float32).at[:, :INPUT_SIZE].set(x)
    h_ref = jnp.maximum(
        jnp.dot(x_pad.astype(jnp.bfloat16), w1_p,
                preferred_element_type=jnp.float32) + b1_p, 0.0)
    ref_bf16 = (jnp.dot(h_ref.astype(jnp.bfloat16), w2_p,
                        preferred_element_type=jnp.float32) + b2_p)[:, :NUM_CLASSES]
    assert jnp.allclose(out, ref_bf16, atol=1e-3, rtol=1e-3), \
        float(jnp.max(jnp.abs(out - ref_bf16)))

    # Reference 2: original full-f32 module semantics (loose tolerance; the
    # kernel deliberately uses bf16 MXU inputs with f32 accumulation).
    ref_f32 = jnp.maximum(x @ w1 + b1, 0.0) @ w2 + b2
    assert jnp.allclose(out, ref_f32, atol=5e-2, rtol=5e-2)

    print("KERNEL_OK")
</pallas_src>

<mosaic_0001>
module attributes {stable_mosaic.version = 11 : i64} {
  func.func @mlp_kernel(%arg0: i32, %arg1: memref<8x896xf32, #tpu.memory_space<vmem>>, %arg2: memref<896x512xbf16, #tpu.memory_space<vmem>>, %arg3: memref<1x512xf32, #tpu.memory_space<vmem>>, %arg4: memref<512x128xbf16, #tpu.memory_space<vmem>>, %arg5: memref<1x128xf32, #tpu.memory_space<vmem>>, %arg6: memref<8x128xf32, #tpu.memory_space<vmem>>) attributes {dimension_semantics = [#tpu.dimension_semantics<parallel>], iteration_bounds = array<i64: 1>, scalar_prefetch = 0 : i64, scratch_operands = 0 : i64, tpu.core_type = #tpu.core_type<tc>, window_params = [{transform_indices = @transform_0, window_bounds = array<i64: 8, 896>}, {pipeline_mode = #tpu.pipeline_mode<synchronous>, transform_indices = @transform_1, window_bounds = array<i64: 896, 512>}, {pipeline_mode = #tpu.pipeline_mode<synchronous>, transform_indices = @transform_2, window_bounds = array<i64: 1, 512>}, {pipeline_mode = #tpu.pipeline_mode<synchronous>, transform_indices = @transform_3, window_bounds = array<i64: 512, 128>}, {pipeline_mode = #tpu.pipeline_mode<synchronous>, transform_indices = @transform_4, window_bounds = array<i64: 1, 128>}, {transform_indices = @transform_5, window_bounds = array<i64: 8, 128>}]} {
    %c0 = arith.constant 0 : index
    %c0_0 = arith.constant 0 : index
    %0 = vector.load %arg1[%c0, %c0_0] : memref<8x896xf32, #tpu.memory_space<vmem>>, vector<8x896xf32>
    %1 = arith.truncf %0 : vector<8x896xf32> to vector<8x896xbf16>
    %c0_1 = arith.constant 0 : index
    %c0_2 = arith.constant 0 : index
    %2 = vector.load %arg2[%c0_1, %c0_2] : memref<896x512xbf16, #tpu.memory_space<vmem>>, vector<896x512xbf16>
    %cst = arith.constant dense<0.000000e+00> : vector<8x512xf32>
    %3 = tpu.matmul %1, %2, %cst {dimension_numbers = #tpu.dot_dimension_numbers<[1], [0], [0], [1], [0, 0, 1, 1], [], []>} : vector<8x896xbf16>, vector<896x512xbf16>, vector<8x512xf32> -> vector<8x512xf32>
    %c0_3 = arith.constant 0 : index
    %c0_4 = arith.constant 0 : index
    %4 = vector.load %arg3[%c0_3, %c0_4] : memref<1x512xf32, #tpu.memory_space<vmem>>, vector<1x512xf32>
    %5 = vector.broadcast %4 : vector<1x512xf32> to vector<8x512xf32>
    %6 = arith.addf %3, %5 : vector<8x512xf32>
    %cst_5 = arith.constant 0.000000e+00 : f32
    %7 = vector.broadcast %cst_5 : f32 to vector<8x512xf32>
    %8 = arith.maximumf %6, %7 : vector<8x512xf32>
    %9 = arith.truncf %8 : vector<8x512xf32> to vector<8x512xbf16>
    %c0_6 = arith.constant 0 : index
    %c0_7 = arith.constant 0 : index
    %10 = vector.load %arg4[%c0_6, %c0_7] : memref<512x128xbf16, #tpu.memory_space<vmem>>, vector<512x128xbf16>
    %cst_8 = arith.constant dense<0.000000e+00> : vector<8x128xf32>
    %11 = tpu.matmul %9, %10, %cst_8 {dimension_numbers = #tpu.dot_dimension_numbers<[1], [0], [0], [1], [0, 0, 1, 1], [], []>} : vector<8x512xbf16>, vector<512x128xbf16>, vector<8x128xf32> -> vector<8x128xf32>
    %c0_9 = arith.constant 0 : index
    %c0_10 = arith.constant 0 : index
    %12 = vector.load %arg5[%c0_9, %c0_10] : memref<1x128xf32, #tpu.memory_space<vmem>>, vector<1x128xf32>
    %13 = vector.broadcast %12 : vector<1x128xf32> to vector<8x128xf32>
    %14 = arith.addf %11, %13 : vector<8x128xf32>
    %c0_11 = arith.constant 0 : index
    %c0_12 = arith.constant 0 : index
    %15 = vector.load %arg6[%c0_11, %c0_12] : memref<8x128xf32, #tpu.memory_space<vmem>>, vector<8x128xf32>
    tpu.vector_store %arg6[%c0_11, %c0_12], %14 {strides = array<i32>} : memref<8x128xf32, #tpu.memory_space<vmem>>, vector<8x128xf32>,
    return
  }
  func.func @transform_0(%arg0: i32) -> (i32, i32) {
    %c0_i32 = arith.constant 0 : i32
    %c0_i32_0 = arith.constant 0 : i32
    return %arg0, %c0_i32 : i32, i32
  }
  func.func @transform_1(%arg0: i32) -> (i32, i32) {
    %c0_i32 = arith.constant 0 : i32
    %c0_i32_0 = arith.constant 0 : i32
    %c0_i32_1 = arith.constant 0 : i32
    return %c0_i32, %c0_i32_0 : i32, i32
  }
  func.func @transform_2(%arg0: i32) -> (i32, i32) {
    %c0_i32 = arith.constant 0 : i32
    %c0_i32_0 = arith.constant 0 : i32
    %c0_i32_1 = arith.constant 0 : i32
    return %c0_i32, %c0_i32_0 : i32, i32
  }
  func.func @transform_3(%arg0: i32) -> (i32, i32) {
    %c0_i32 = arith.constant 0 : i32
    %c0_i32_0 = arith.constant 0 : i32
    %c0_i32_1 = arith.constant 0 : i32
    return %c0_i32, %c0_i32_0 : i32, i32
  }
  func.func @transform_4(%arg0: i32) -> (i32, i32) {
    %c0_i32 = arith.constant 0 : i32
    %c0_i32_0 = arith.constant 0 : i32
    %c0_i32_1 = arith.constant 0 : i32
    return %c0_i32, %c0_i32_0 : i32, i32
  }
  func.func @transform_5(%arg0: i32) -> (i32, i32) {
    %c0_i32 = arith.constant 0 : i32
    %c0_i32_0 = arith.constant 0 : i32
    return %arg0, %c0_i32 : i32, i32
  }
}

</mosaic_0001>

<bundles_post_ra>
// kernel: tpu_custom_call.1
= control target key start
LH: loop header
LB: loop body
LE: loop exit
PB: predicated region body
PF: predicated region fallthrough
CT: control target
= control target key end

     0   :  { %10 = vsyncpa [#allocation3], 0  ;;  %s3699_s0 = inlined_call_operand.hbm [shape: f32[8,896], index: 0, kind: input, shape index: {}]   ;;  %s3700_s1 = inlined_call_operand.hbm [shape: bf16[896,512], index: 1, kind: input, shape index: {}]   ;;  %s3701_s2 = inlined_call_operand.hbm [shape: f32[1,512], index: 2, kind: input, shape index: {}]   ;;  %s3702_s3 = inlined_call_operand.hbm [shape: bf16[512,128], index: 3, kind: input, shape index: {}]   ;;  %s3703_s4 = inlined_call_operand.vmem [shape: f32[1,128], index: 4, kind: input, shape index: {}]   ;;  %s3704_s5 = inlined_call_operand.hbm [shape: f32[8,128], index: 5, kind: output, shape index: {}]  }
   0x1   :  { %11 = vsyncpa [#allocation6], 0 }
   0x2   :  { %12 = vsyncpa [#allocation9], 0  ;;  %s29_s20 = sshll.u32 %s3700_s1, 4  ;;  %s30_s20 = int_to_ptr.hbm [resolvable:$true] %s29_s20 }
   0x3   :  { %13 = vsyncpa [#allocation4], 0  ;;  %s3570_s21 = smov [#allocation5]   ;;  %s19_s25 = sshll.u32 %s3699_s0, 4  ;;  %s20_s25 = int_to_ptr.hbm [resolvable:$true] %s19_s25 }
   0x4   :  { %s31_s22 = sshll.u32 %s3570_s21, 4  ;;  %s3571_s26 = smov 256   ;;  %s32_s22 = int_to_ptr.vmem [resolvable:$true] %s31_s22 }
   0x5   :  { %s3572_s27 = smov 16   ;;  %s3573_s28 = smov [#allocation2]  }
   0x6   :  { %37 = dma.hbm_to_vmem [thread:$0]  %s30_s20, 28672, %s32_s22, [#allocation6], %s3571_s26, %s3571_s26, %s3572_s27  }
   0x7   :  { %s21_s29 = sshll.u32 %s3573_s28, 4  ;;  %s43_s7 = sshll.u32 %s3701_s2, 4  ;;  %s22_s29 = int_to_ptr.vmem [resolvable:$true] %s21_s29  ;;  %s44_s7 = int_to_ptr.hbm [resolvable:$true] %s43_s7 }
   0x8   :  { %24 = dma.hbm_to_vmem [thread:$0]  %s20_s25, 896, %s22_s29, [#allocation3]  }
   0x9   :  { %s53_s9 = sshll.u32 %s3702_s3, 4  ;;  %s3574_s10 = smov [#allocation7]   ;;  %s54_s9 = int_to_ptr.hbm [resolvable:$true] %s53_s9 }
   0xa   :  { %s45_s11 = sshll.u32 %s3574_s10, 4  ;;  %s3575_s0 = smov [#allocation8]   ;;  %s46_s11 = int_to_ptr.vmem [resolvable:$true] %s45_s11 }
   0xb   :  { %48 = dma.hbm_to_vmem [thread:$0]  %s44_s7, 64, %s46_s11, [#allocation6]  }
   0xc   :  { %s55_s12 = sshll.u32 %s3575_s0, 4  ;;  %s3576_s13 = smov 64   ;;  %s56_s12 = int_to_ptr.vmem [resolvable:$true] %s55_s12 }
   0xd   :  { %s3577_s14 = smov 4  }
   0xe   :  { %61 = dma.hbm_to_vmem [thread:$0]  %s54_s9, 4096, %s56_s12, [#allocation9], %s3576_s13, %s3576_s13, %s3577_s14  }
   0xf   :  { %3562 = dma.done.wait [#allocation3], 896  }
  0x10   :  { %3563 = vsyncadd [#allocation3], 4294966400 }
  0x11   :  { %3564 = dma.done.wait [#allocation6], 28736  }
  0x12   :  { %3565 = vsyncadd [#allocation6], 4294938560 }
  0x13   :  { %3566 = dma.done.wait [#allocation9], 4096  }
  0x14   :  { %3567 = vsyncadd [#allocation9], 4294963200  ;;  %v2266_v0 = vld [vmem:[#allocation5 + $0xe0] sm:$0xf]  ;;  %v3206_v1 = vld [vmem:[#allocation5 + $0xec] sm:$0xf0] }
  0x15   :  { %v2394_v2 = vld [vmem:[#allocation5 + $0x1e0] sm:$0xf]  ;;  %v2267_v3 = vor.u32 %v3206_v1, %v2266_v0  ;;  %v3238_v4 = vld [vmem:[#allocation5 + $0x1ec] sm:$0xf0]  ;;  %s3578_s15 = smov [#allocation10]   ;;  %s2140_s19 = sshll.u32 %s3704_s5, 4  ;;  %s2141_s19 = int_to_ptr.hbm [resolvable:$true] %s2140_s19 }
  0x16   :  { %v2522_v5 = vld [vmem:[#allocation5 + $0x2e0] sm:$0xf]  ;;  %v3270_v6 = vld [vmem:[#allocation5 + $0x2ec] sm:$0xf0]  ;;  %v2395_v7 = vor.u32 %v3238_v4, %v2394_v2  ;;  %s2138_s16 = sshll.u32 %s3578_s15, 4  ;;  %s2139_s16 = int_to_ptr.vmem [resolvable:$true] %s2138_s16 }
  0x17   :  { %v2523_v8 = vor.u32 %v3270_v6, %v2522_v5  ;;  %v2650_v9 = vld [vmem:[#allocation5 + $0x3e0] sm:$0xf]  ;;  %v3302_v10 = vld [vmem:[#allocation5 + $0x3ec] sm:$0xf0]  ;;  %1448 = vmatpush.bf16.msra.mxu0 %v2267_v3 }
  0x18   :  { %v2250_v11 = vld [vmem:[#allocation5 + $0xc0] sm:$0xf]  ;;  %v2651_v12 = vor.u32 %v3302_v10, %v2650_v9  ;;  %v3202_v13 = vld [vmem:[#allocation5 + $0xcc] sm:$0xf0]  ;;  %1461 = vmatpush.bf16.msra.mxu1 %v2395_v7 }
  0x19   :  { %v2378_v14 = vld [vmem:[#allocation5 + $0x1c0] sm:$0xf]  ;;  %v3234_v15 = vld [vmem:[#allocation5 + $0x1cc] sm:$0xf0]  ;;  %1474 = vmatpush.bf16.msra.mxu2 %v2523_v8  ;;  %v2251_v16 = vor.u32 %v3202_v13, %v2250_v11 }
  0x1a   :  { %v2379_v17 = vor.u32 %v3234_v15, %v2378_v14  ;;  %v2506_v18 = vld [vmem:[#allocation5 + $0x2c0] sm:$0xf]  ;;  %v3266_v19 = vld [vmem:[#allocation5 + $0x2cc] sm:$0xf0]  ;;  %1487 = vmatpush.bf16.msra.mxu3 %v2651_v12 }
  0x1b   :  { %v2634_v20 = vld [vmem:[#allocation5 + $0x3c0] sm:$0xf]  ;;  %v2507_v21 = vor.u32 %v3266_v19, %v2506_v18  ;;  %v3298_v22 = vld [vmem:[#allocation5 + $0x3cc] sm:$0xf0]  ;;  %1449 = vmatpush.bf16.msra.mxu0 %v2251_v16 }
  0x1c   :  { %v2234_v23 = vld [vmem:[#allocation5 + $0xa0] sm:$0xf]  ;;  %v3198_v24 = vld [vmem:[#allocation5 + $0xac] sm:$0xf0]  ;;  %v2635_v25 = vor.u32 %v3298_v22, %v2634_v20  ;;  %1462 = vmatpush.bf16.msra.mxu1 %v2379_v17 }
  0x1d   :  { %v2362_v26 = vld [vmem:[#allocation5 + $0x1a0] sm:$0xf]  ;;  %v3230_v27 = vld [vmem:[#allocation5 + $0x1ac] sm:$0xf0]  ;;  %v2235_v29 = vor.u32 %v3198_v24, %v2234_v23  ;;  %1475 = vmatpush.bf16.msra.mxu2 %v2507_v21 }
  0x1e   :  { %v2490_v28 = vld [vmem:[#allocation5 + $0x2a0] sm:$0xf]  ;;  %v3262_v30 = vld [vmem:[#allocation5 + $0x2ac] sm:$0xf0]  ;;  %v2363_v33 = vor.u32 %v3230_v27, %v2362_v26  ;;  %1488 = vmatpush.bf16.msra.mxu3 %v2635_v25 }
  0x1f   :  { %v2618_v31 = vld [vmem:[#allocation5 + $0x3a0] sm:$0xf]  ;;  %v3294_v32 = vld [vmem:[#allocation5 + $0x3ac] sm:$0xf0]  ;;  %v2491_v34 = vor.u32 %v3262_v30, %v2490_v28  ;;  %1450 = vmatpush.bf16.msra.mxu0 %v2235_v29 }
  0x20   :  { %v2218_v35 = vld [vmem:[#allocation5 + $0x80] sm:$0xf]  ;;  %v3194_v36 = vld [vmem:[#allocation5 + $0x8c] sm:$0xf0]  ;;  %v2619_v38 = vor.u32 %v3294_v32, %v2618_v31  ;;  %1463 = vmatpush.bf16.msra.mxu1 %v2363_v33 }
  0x21   :  { %v2346_v37 = vld [vmem:[#allocation5 + $0x180] sm:$0xf]  ;;  %v3226_v39 = vld [vmem:[#allocation5 + $0x18c] sm:$0xf0]  ;;  %v2219_v44 = vor.u32 %v3194_v36, %v2218_v35  ;;  %1476 = vmatpush.bf16.msra.mxu2 %v2491_v34 }
  0x22   :  { %v2474_v40 = vld [vmem:[#allocation5 + $0x280] sm:$0xf]  ;;  %v3258_v41 = vld [vmem:[#allocation5 + $0x28c] sm:$0xf0]  ;;  %v2347_v45 = vor.u32 %v3226_v39, %v2346_v37  ;;  %1489 = vmatpush.bf16.msra.mxu3 %v2619_v38  ;;  %v3204_v37 = vld [vmem:[#allocation5 + $0xe4] sm:$0xf] }
  0x23   :  { %v2602_v42 = vld [vmem:[#allocation5 + $0x380] sm:$0xf]  ;;  %v3290_v43 = vld [vmem:[#allocation5 + $0x38c] sm:$0xf0]  ;;  %v2475_v46 = vor.u32 %v3258_v41, %v2474_v40  ;;  %1451 = vmatpush.bf16.msra.mxu0 %v2219_v44  ;;  %v2268_v38 = vld [vmem:[#allocation5 + $0xf0] sm:$0xf0] }
  0x24   :  { %v2202_v47 = vld [vmem:[#allocation5 + $0x60] sm:$0xf]  ;;  %v3190_v48 = vld [vmem:[#allocation5 + $0x6c] sm:$0xf0]  ;;  %v2603_v50 = vor.u32 %v3290_v43, %v2602_v42  ;;  %1464 = vmatpush.bf16.msra.mxu1 %v2347_v45 }
  0x25   :  { %v2330_v49 = vld [vmem:[#allocation5 + $0x160] sm:$0xf]  ;;  %v3222_v51 = vld [vmem:[#allocation5 + $0x16c] sm:$0xf0]  ;;  %v2203_v56 = vor.u32 %v3190_v48, %v2202_v47  ;;  %1477 = vmatpush.bf16.msra.mxu2 %v2475_v46  ;;  %v2271_v46 = vor.u32 %v3204_v37, %v2268_v38 }
  0x26   :  { %v2458_v52 = vld [vmem:[#allocation5 + $0x260] sm:$0xf]  ;;  %v3254_v53 = vld [vmem:[#allocation5 + $0x26c] sm:$0xf0]  ;;  %v2331_v57 = vor.u32 %v3222_v51, %v2330_v49  ;;  %1490 = vmatpush.bf16.msra.mxu3 %v2603_v50  ;;  %v3200_v50 = vld [vmem:[#allocation5 + $0xc4] sm:$0xf] }
  0x27   :  { %v2586_v54 = vld [vmem:[#allocation5 + $0x360] sm:$0xf]  ;;  %v3286_v55 = vld [vmem:[#allocation5 + $0x36c] sm:$0xf0]  ;;  %v2459_v58 = vor.u32 %v3254_v53, %v2458_v52  ;;  %1452 = vmatpush.bf16.msra.mxu0 %v2203_v56  ;;  %v2252_v51 = vld [vmem:[#allocation5 + $0xd0] sm:$0xf0] }
  0x28   :  { %v2186_v59 = vld [vmem:[#allocation5 + $0x40] sm:$0xf]  ;;  %v3186_v60 = vld [vmem:[#allocation5 + $0x4c] sm:$0xf0]  ;;  %v2587_v62 = vor.u32 %v3286_v55, %v2586_v54  ;;  %1465 = vmatpush.bf16.msra.mxu1 %v2331_v57 }
  0x29   :  { %v2314_v61 = vld [vmem:[#allocation5 + $0x140] sm:$0xf]  ;;  %v3218_v63 = vld [vmem:[#allocation5 + $0x14c] sm:$0xf0]  ;;  %v2187_v4 = vor.u32 %v3186_v60, %v2186_v59  ;;  %1478 = vmatpush.bf16.msra.mxu2 %v2459_v58  ;;  %v2255_v59 = vor.u32 %v3200_v50, %v2252_v51 }
  0x2a   :  { %v2442_v0 = vld [vmem:[#allocation5 + $0x240] sm:$0xf]  ;;  %v3250_v1 = vld [vmem:[#allocation5 + $0x24c] sm:$0xf0]  ;;  %v2315_v5 = vor.u32 %v3218_v63, %v2314_v61  ;;  %1491 = vmatpush.bf16.msra.mxu3 %v2587_v62  ;;  %v3196_v62 = vld [vmem:[#allocation5 + $0xa4] sm:$0xf] }
  0x2b   :  { %v2570_v2 = vld [vmem:[#allocation5 + $0x340] sm:$0xf]  ;;  %v3282_v3 = vld [vmem:[#allocation5 + $0x34c] sm:$0xf0]  ;;  %v2443_v6 = vor.u32 %v3250_v1, %v2442_v0  ;;  %1453 = vmatpush.bf16.msra.mxu0 %v2187_v4  ;;  %v2236_v63 = vld [vmem:[#allocation5 + $0xb0] sm:$0xf0] }
  0x2c   :  { %v2170_v7 = vld [vmem:[#allocation5 + $0x20] sm:$0xf]  ;;  %v3182_v8 = vld [vmem:[#allocation5 + $0x2c] sm:$0xf0]  ;;  %v2571_v10 = vor.u32 %v3282_v3, %v2570_v2  ;;  %1466 = vmatpush.bf16.msra.mxu1 %v2315_v5  ;;  %v82_v3 = vld [vmem:[#allocation2 + $0x10] sm:$0xff] }
  0x2d   :  { %v2298_v9 = vld [vmem:[#allocation5 + $0x120] sm:$0xf]  ;;  %v3214_v11 = vld [vmem:[#allocation5 + $0x12c] sm:$0xf0]  ;;  %v2171_v16 = vor.u32 %v3182_v8, %v2170_v7  ;;  %1479 = vmatpush.bf16.msra.mxu2 %v2443_v6  ;;  %v80_v4 = vld [vmem:[#allocation2] sm:$0xff]  ;;  %v3621_v8 = vpack.c.bf16 %v82_v3, %v82_v3 }
  0x2e   :  { %v2426_v12 = vld [vmem:[#allocation5 + $0x220] sm:$0xf]  ;;  %v3246_v13 = vld [vmem:[#allocation5 + $0x22c] sm:$0xf0]  ;;  %v2299_v19 = vor.u32 %v3214_v11, %v2298_v9  ;;  %1492 = vmatpush.bf16.msra.mxu3 %v2571_v10  ;;  %v3623_v9 = vpack.c.bf16 %v80_v4, %v80_v4  ;;  %v2239_v11 = vor.u32 %v3196_v62, %v2236_v63  ;;  %v2156_v3 = vld [vmem:[#allocation5 + $0x10] sm:$0xf0] }
  0x2f   :  { %v2554_v14 = vld [vmem:[#allocation5 + $0x320] sm:$0xf]  ;;  %v3278_v15 = vld [vmem:[#allocation5 + $0x32c] sm:$0xf0]  ;;  %v2427_v20 = vor.u32 %v3246_v13, %v2426_v12  ;;  %1454 = vmatpush.bf16.msra.mxu0 %v2171_v16  ;;  %v3192_v16 = vld [vmem:[#allocation5 + $0x84] sm:$0xf] }
  0x30   :  { %v2154_v17 = vld [vmem:[#allocation5] sm:$0xf]  ;;  %v3178_v18 = vld [vmem:[#allocation5 + $0xc] sm:$0xf0]  ;;  %v2555_v24 = vor.u32 %v3278_v15, %v2554_v14  ;;  %1467 = vmatpush.bf16.msra.mxu1 %v2299_v19  ;;  %v3236_v4 = vld [vmem:[#allocation5 + $0x1e4] sm:$0xf] }
  0x31   :  { %v2282_v21 = vld [vmem:[#allocation5 + $0x100] sm:$0xf]  ;;  %v3210_v22 = vld [vmem:[#allocation5 + $0x10c] sm:$0xf0]  ;;  %v2155_v31 = vor.u32 %v3178_v18, %v2154_v17  ;;  %1480 = vmatpush.bf16.msra.mxu2 %v2427_v20  ;;  %v2220_v17 = vld [vmem:[#allocation5 + $0x90] sm:$0xf0] }
  0x32   :  { %v2410_v23 = vld [vmem:[#allocation5 + $0x200] sm:$0xf]  ;;  %v3242_v25 = vld [vmem:[#allocation5 + $0x20c] sm:$0xf0]  ;;  %v2283_v35 = vor.u32 %v3210_v22, %v2282_v21  ;;  %1493 = vmatpush.bf16.msra.mxu3 %v2555_v24 }
  0x33   :  { %v2538_v26 = vld [vmem:[#allocation5 + $0x300] sm:$0xf]  ;;  %v3274_v27 = vld [vmem:[#allocation5 + $0x30c] sm:$0xf0]  ;;  %v2411_v36 = vor.u32 %v3242_v25, %v2410_v23  ;;  %1455 = vmatpush.bf16.msra.mxu0 %v2155_v31  ;;  %v2204_v31 = vld [vmem:[#allocation5 + $0x70] sm:$0xf0] }
  0x34   :  { %v2778_v28 = vld [vmem:[#allocation5 + $0x4e0] sm:$0xf]  ;;  %v3334_v29 = vld [vmem:[#allocation5 + $0x4ec] sm:$0xf0]  ;;  %v2539_v39 = vor.u32 %v3274_v27, %v2538_v26  ;;  %1468 = vmatpush.bf16.msra.mxu1 %v2283_v35  ;;  %v2223_v26 = vor.u32 %v3192_v16, %v2220_v17  ;;  %v3332_v16 = vld [vmem:[#allocation5 + $0x4e4] sm:$0xf] }
  0x35   :  { %v2906_v30 = vld [vmem:[#allocation5 + $0x5e0] sm:$0xf]  ;;  %v3366_v32 = vld [vmem:[#allocation5 + $0x5ec] sm:$0xf0]  ;;  %v2779_v40 = vor.u32 %v3334_v29, %v2778_v28  ;;  %1481 = vmatpush.bf16.msra.mxu2 %v2411_v36  ;;  %v2780_v17 = vld [vmem:[#allocation5 + $0x4f0] sm:$0xf0] }
  0x36   :  { %v3034_v33 = vld [vmem:[#allocation5 + $0x6e0] sm:$0xf]  ;;  %v3398_v34 = vld [vmem:[#allocation5 + $0x6ec] sm:$0xf0]  ;;  %v2907_v41 = vor.u32 %v3366_v32, %v2906_v30  ;;  %1494 = vmatpush.bf16.msra.mxu3 %v2539_v39  ;;  %1456 = vmatmul.bf16.vlgmr.msra.gmra.mxu0 %v3623_v9  ;;  %v3188_v30 = vld [vmem:[#allocation5 + $0x64] sm:$0xf] }
  0x37   :  { %v3035_v42 = vor.u32 %v3398_v34, %v3034_v33  ;;  %v2762_v43 = vld [vmem:[#allocation5 + $0x4c0] sm:$0xf]  ;;  %v3330_v44 = vld [vmem:[#allocation5 + $0x4cc] sm:$0xf0]  ;;  %1500 = vmatpush.bf16.msrb.mxu0 %v2779_v40  ;;  %v2207_v38 = vor.u32 %v3188_v30, %v2204_v31  ;;  %v2508_v30 = vld [vmem:[#allocation5 + $0x2d0] sm:$0xf0] }
  0x38   :  { %v2890_v45 = vld [vmem:[#allocation5 + $0x5c0] sm:$0xf]  ;;  %v3362_v47 = vld [vmem:[#allocation5 + $0x5cc] sm:$0xf0]  ;;  %v2763_v52 = vor.u32 %v3330_v44, %v2762_v43  ;;  %1513 = vmatpush.bf16.msrb.mxu1 %v2907_v41  ;;  %1482 = vmatmul.bf16.vlgmr.msra.gmra.mxu2 %v3621_v8  ;;  %v2188_v43 = vld [vmem:[#allocation5 + $0x50] sm:$0xf0] }
  0x39   :  { %v3018_v48 = vld [vmem:[#allocation5 + $0x6c0] sm:$0xf]  ;;  %v3394_v49 = vld [vmem:[#allocation5 + $0x6cc] sm:$0xf0]  ;;  %1526 = vmatpush.bf16.msrb.mxu2 %v3035_v42  ;;  %v2891_v54 = vor.u32 %v3362_v47, %v2890_v45  ;;  %v3184_v42 = vld [vmem:[#allocation5 + $0x44] sm:$0xf] }
  0x3a   :  { %v2746_v53 = vld [vmem:[#allocation5 + $0x4a0] sm:$0xf]  ;;  %v3019_v55 = vor.u32 %v3394_v49, %v3018_v48  ;;  %v3326_v56 = vld [vmem:[#allocation5 + $0x4ac] sm:$0xf0]  ;;  %1539 = vmatpush.bf16.msrb.mxu3 %v2271_v46  ;;  %v2191_v50 = vor.u32 %v3184_v42, %v2188_v43  ;;  %v3296_v31 = vld [vmem:[#allocation5 + $0x3c4] sm:$0xf] }
  0x3b   :  { %v2874_v57 = vld [vmem:[#allocation5 + $0x5a0] sm:$0xf]  ;;  %v3358_v58 = vld [vmem:[#allocation5 + $0x5ac] sm:$0xf0]  ;;  %1501 = vmatpush.bf16.msrb.mxu0 %v2763_v52  ;;  %v2747_v0 = vor.u32 %v3326_v56, %v2746_v53  ;;  %v2364_v42 = vld [vmem:[#allocation5 + $0x1b0] sm:$0xf0] }
  0x3c   :  { %v3002_v60 = vld [vmem:[#allocation5 + $0x6a0] sm:$0xf]  ;;  %v3390_v61 = vld [vmem:[#allocation5 + $0x6ac] sm:$0xf0]  ;;  %v2875_v1 = vor.u32 %v3358_v58, %v2874_v57  ;;  %1514 = vmatpush.bf16.msrb.mxu1 %v2891_v54  ;;  %v3180_v54 = vld [vmem:[#allocation5 + $0x24] sm:$0xf] }
  0x3d   :  { %v2730_v2 = vld [vmem:[#allocation5 + $0x480] sm:$0xf]  ;;  %1527 = vmatpush.bf16.msrb.mxu2 %v3019_v55  ;;  %v3003_v5 = vor.u32 %v3390_v61, %v3002_v60  ;;  %v3322_v6 = vld [vmem:[#allocation5 + $0x48c] sm:$0xf0]  ;;  %v2172_v55 = vld [vmem:[#allocation5 + $0x30] sm:$0xf0] }
  0x3e   :  { %v2858_v7 = vld [vmem:[#allocation5 + $0x580] sm:$0xf]  ;;  %1540 = vmatpush.bf16.msrb.mxu3 %v2255_v59  ;;  %v3354_v12 = vld [vmem:[#allocation5 + $0x58c] sm:$0xf0]  ;;  %v2731_v18 = vor.u32 %v3322_v6, %v2730_v2  ;;  %v3176_v2 = vld [vmem:[#allocation5 + $0x4] sm:$0xf] }
  0x3f   :  { %v83_v10 = vld [vmem:[#allocation2 + $0x18] sm:$0xff]  ;;  %v3386_v14 = vld [vmem:[#allocation5 + $0x68c] sm:$0xf0]  ;;  %1502 = vmatpush.bf16.msrb.mxu0 %v2747_v0  ;;  %v2859_v20 = vor.u32 %v3354_v12, %v2858_v7  ;;  %v2175_v0 = vor.u32 %v3180_v54, %v2172_v55  ;;  %v2652_v12 = vld [vmem:[#allocation5 + $0x3f0] sm:$0xf0] }
  0x40   :  { %v2986_v13 = vld [vmem:[#allocation5 + $0x680] sm:$0xf]  ;;  %v3625_v15 = vpack.c.bf16 %v83_v10, %v83_v10  ;;  %v81_v19 = vld [vmem:[#allocation2 + $0x8] sm:$0xff]  ;;  %1515 = vmatpush.bf16.msrb.mxu1 %v2875_v1  ;;  %v3268_v6 = vld [vmem:[#allocation5 + $0x2e4] sm:$0xf] }
  0x41   :  { %1528 = vmatpush.bf16.msrb.mxu2 %v3003_v5  ;;  %v2987_v21 = vor.u32 %v3386_v14, %v2986_v13  ;;  %v2714_v22 = vld [vmem:[#allocation5 + $0x460] sm:$0xf]  ;;  %v3318_v23 = vld [vmem:[#allocation5 + $0x46c] sm:$0xf0]  ;;  %v3630_v25 = vpack.c.bf16 %v81_v19, %v81_v19  ;;  %v2396_v5 = vld [vmem:[#allocation5 + $0x1f0] sm:$0xf0]  ;;  %v2159_v19 = vor.u32 %v3176_v2, %v2156_v3 }
  0x42   :  { %1495 = vmatmul.bf16.vlgmr.msra.gmra.mxu3 %v3625_v15  ;;  %v2842_v24 = vld [vmem:[#allocation5 + $0x560] sm:$0xf]  ;;  %v3350_v27 = vld [vmem:[#allocation5 + $0x56c] sm:$0xf0]  ;;  %v2715_v32 = vor.u32 %v3318_v23, %v2714_v22  ;;  %v2524_v10 = vld [vmem:[#allocation5 + $0x2f0] sm:$0xf0] }
  0x43   :  { %1541 = vmatpush.bf16.msrb.mxu3 %v2239_v11  ;;  %v2970_v28 = vld [vmem:[#allocation5 + $0x660] sm:$0xf]  ;;  %v3382_v29 = vld [vmem:[#allocation5 + $0x66c] sm:$0xf0]  ;;  %1469 = vmatmul.bf16.vlgmr.msra.gmra.mxu1 %v3630_v25  ;;  %v2843_v33 = vor.u32 %v3350_v27, %v2842_v24  ;;  %v3300_v11 = vld [vmem:[#allocation5 + $0x3e4] sm:$0xf]  ;;  %v2527_v23 = vor.u32 %v3268_v6, %v2524_v10 }
  0x44   :  { %1503 = vmatpush.bf16.msrb.mxu0 %v2731_v18  ;;  %1516 = vmatpush.bf16.msrb.mxu1 %v2859_v20  ;;  %v2971_v34 = vor.u32 %v3382_v29, %v2970_v28  ;;  %v2698_v35 = vld [vmem:[#allocation5 + $0x440] sm:$0xf]  ;;  %v3314_v36 = vld [vmem:[#allocation5 + $0x44c] sm:$0xf0]  ;;  %v86_v18 = vld [vmem:[#allocation2 + $0x30] sm:$0xff]  ;;  %v2399_v20 = vor.u32 %v3236_v4, %v2396_v5  ;;  %v2655_v24 = vor.u32 %v3300_v11, %v2652_v12 }
  0x45   :  { %1529 = vmatpush.bf16.msrb.mxu2 %v2987_v21  ;;  %v2826_v37 = vld [vmem:[#allocation5 + $0x540] sm:$0xf]  ;;  %v3346_v39 = vld [vmem:[#allocation5 + $0x54c] sm:$0xf0]  ;;  %v2699_v44 = vor.u32 %v3314_v36, %v2698_v35  ;;  %v84_v21 = vld [vmem:[#allocation2 + $0x20] sm:$0xff]  ;;  %v2783_v29 = vor.u32 %v3332_v16, %v2780_v17 }
  0x46   :  { %v2954_v40 = vld [vmem:[#allocation5 + $0x640] sm:$0xf]  ;;  %v3378_v41 = vld [vmem:[#allocation5 + $0x64c] sm:$0xf0]  ;;  %v2827_v45 = vor.u32 %v3346_v39, %v2826_v37  ;;  %v2380_v27 = vld [vmem:[#allocation5 + $0x1d0] sm:$0xf0]  ;;  %v3635_v36 = vpack.c.bf16 %v84_v21, %v84_v21 }
  0x47   :  { %1542 = vmatpush.bf16.msrb.mxu3 %v2223_v26  ;;  %v2955_v46 = vor.u32 %v3378_v41, %v2954_v40  ;;  %v2682_v47 = vld [vmem:[#allocation5 + $0x420] sm:$0xf]  ;;  %v3310_v48 = vld [vmem:[#allocation5 + $0x42c] sm:$0xf0]  ;;  %v3232_v26 = vld [vmem:[#allocation5 + $0x1c4] sm:$0xf] }
  0x48   :  { %1504 = vmatpush.bf16.msrb.mxu0 %v2715_v32  ;;  %1517 = vmatpush.bf16.msrb.mxu1 %v2843_v33  ;;  %v2810_v49 = vld [vmem:[#allocation5 + $0x520] sm:$0xf]  ;;  %v3342_v51 = vld [vmem:[#allocation5 + $0x52c] sm:$0xf0]  ;;  %v2683_v56 = vor.u32 %v3310_v48, %v2682_v47  ;;  %v3264_v28 = vld [vmem:[#allocation5 + $0x2c4] sm:$0xf]  ;;  %v3633_v33 = vpack.c.bf16 %v86_v18, %v86_v18 }
  0x49   :  { %1530 = vmatpush.bf16.msrb.mxu2 %v2971_v34  ;;  %v2938_v52 = vld [vmem:[#allocation5 + $0x620] sm:$0xf]  ;;  %v3374_v53 = vld [vmem:[#allocation5 + $0x62c] sm:$0xf0]  ;;  %v2811_v59 = vor.u32 %v3342_v51, %v2810_v49  ;;  %v2636_v32 = vld [vmem:[#allocation5 + $0x3d0] sm:$0xf0]  ;;  %v2511_v39 = vor.u32 %v3264_v28, %v2508_v30 }
  0x4a   :  { %v2666_v57 = vld [vmem:[#allocation5 + $0x400] sm:$0xf]  ;;  %v3306_v58 = vld [vmem:[#allocation5 + $0x40c] sm:$0xf0]  ;;  %v2939_v60 = vor.u32 %v3374_v53, %v2938_v52  ;;  %v3328_v34 = vld [vmem:[#allocation5 + $0x4c4] sm:$0xf]  ;;  %v2639_v40 = vor.u32 %v3296_v31, %v2636_v32 }
  0x4b   :  { %1543 = vmatpush.bf16.msrb.mxu3 %v2207_v38  ;;  %v2794_v61 = vld [vmem:[#allocation5 + $0x500] sm:$0xf]  ;;  %v3338_v62 = vld [vmem:[#allocation5 + $0x50c] sm:$0xf0]  ;;  %v2667_v7 = vor.u32 %v3306_v58, %v2666_v57  ;;  %v2764_v35 = vld [vmem:[#allocation5 + $0x4d0] sm:$0xf0]  ;;  %v2383_v38 = vor.u32 %v3232_v26, %v2380_v27 }
  0x4c   :  { %1505 = vmatpush.bf16.msrb.mxu0 %v2699_v44  ;;  %1518 = vmatpush.bf16.msrb.mxu1 %v2827_v45  ;;  %v2922_v63 = vld [vmem:[#allocation5 + $0x600] sm:$0xf]  ;;  %v3370_v1 = vld [vmem:[#allocation5 + $0x60c] sm:$0xf0]  ;;  %v2795_v13 = vor.u32 %v3338_v62, %v2794_v61  ;;  %v3228_v41 = vld [vmem:[#allocation5 + $0x1a4] sm:$0xf]  ;;  %v2767_v44 = vor.u32 %v3328_v34, %v2764_v35 }
  0x4d   :  { %1531 = vmatpush.bf16.msrb.mxu2 %v2955_v46  ;;  %v2923_v14 = vor.u32 %v3370_v1, %v2922_v63  ;;  %v85_v22 = vld [vmem:[#allocation2 + $0x28] sm:$0xff]  ;;  %v3260_v43 = vld [vmem:[#allocation5 + $0x2a4] sm:$0xf] }
  0x4e   :  { %v3637_v37 = vpack.c.bf16 %v85_v22, %v85_v22  ;;  %v2492_v45 = vld [vmem:[#allocation5 + $0x2b0] sm:$0xf0]  ;;  %v3292_v46 = vld [vmem:[#allocation5 + $0x3a4] sm:$0xf] }
  0x4f   :  { %1544 = vmatpush.bf16.msrb.mxu3 %v2191_v50  ;;  %v2620_v47 = vld [vmem:[#allocation5 + $0x3b0] sm:$0xf0]  ;;  %v3324_v48 = vld [vmem:[#allocation5 + $0x4a4] sm:$0xf]  ;;  %v2367_v50 = vor.u32 %v3228_v41, %v2364_v42  ;;  %v2495_v51 = vor.u32 %v3260_v43, %v2492_v45 }
  0x50   :  { %1506 = vmatpush.bf16.msrb.mxu0 %v2683_v56  ;;  %1519 = vmatpush.bf16.msrb.mxu1 %v2811_v59  ;;  %v2748_v49 = vld [vmem:[#allocation5 + $0x4b0] sm:$0xf0]  ;;  %v2623_v52 = vor.u32 %v3292_v46, %v2620_v47  ;;  %v3224_v53 = vld [vmem:[#allocation5 + $0x184] sm:$0xf] }
  0x51   :  { %1532 = vmatpush.bf16.msrb.mxu2 %v2939_v60  ;;  %v2348_v54 = vld [vmem:[#allocation5 + $0x190] sm:$0xf0]  ;;  %v3256_v55 = vld [vmem:[#allocation5 + $0x284] sm:$0xf]  ;;  %v2751_v56 = vor.u32 %v3324_v48, %v2748_v49 }
  0x52   :  { %v2476_v57 = vld [vmem:[#allocation5 + $0x290] sm:$0xf0]  ;;  %v3288_v58 = vld [vmem:[#allocation5 + $0x384] sm:$0xf]  ;;  %v2351_v62 = vor.u32 %v3224_v53, %v2348_v54 }
  0x53   :  { %1545 = vmatpush.bf16.msrb.mxu3 %v2175_v0  ;;  %v2604_v59 = vld [vmem:[#allocation5 + $0x390] sm:$0xf0]  ;;  %v3320_v60 = vld [vmem:[#allocation5 + $0x484] sm:$0xf]  ;;  %v2479_v63 = vor.u32 %v3256_v55, %v2476_v57 }
  0x54   :  { %1507 = vmatpush.bf16.msrb.mxu0 %v2667_v7  ;;  %1520 = vmatpush.bf16.msrb.mxu1 %v2795_v13  ;;  %v2732_v61 = vld [vmem:[#allocation5 + $0x490] sm:$0xf0]  ;;  %v2607_v0 = vor.u32 %v3288_v58, %v2604_v59  ;;  %v3220_v1 = vld [vmem:[#allocation5 + $0x164] sm:$0xf]  ;;  %v2274_v58 = vld [vmem:[#allocation5 + $0xe8] sm:$0xf] }
  0x55   :  { %1533 = vmatpush.bf16.msrb.mxu2 %v2923_v14  ;;  %v2332_v2 = vld [vmem:[#allocation5 + $0x170] sm:$0xf0]  ;;  %v3252_v3 = vld [vmem:[#allocation5 + $0x264] sm:$0xf]  ;;  %v2735_v4 = vor.u32 %v3320_v60, %v2732_v61  ;;  %v3207_v59 = vld [vmem:[#allocation5 + $0xf4] sm:$0xf0] }
  0x56   :  { %v2460_v5 = vld [vmem:[#allocation5 + $0x270] sm:$0xf0]  ;;  %v3284_v6 = vld [vmem:[#allocation5 + $0x364] sm:$0xf]  ;;  %v2335_v12 = vor.u32 %v3220_v1, %v2332_v2 }
  0x57   :  { %1546 = vmatpush.bf16.msrb.mxu3 %v2159_v19  ;;  %1508 = vmatmul.bf16.vlgmr.msrb.gmra.mxu0 %v3635_v36  ;;  %v2588_v7 = vld [vmem:[#allocation5 + $0x370] sm:$0xf0]  ;;  %v3316_v10 = vld [vmem:[#allocation5 + $0x464] sm:$0xf]  ;;  %v2463_v13 = vor.u32 %v3252_v3, %v2460_v5  ;;  %v2275_v3 = vor.u32 %v3207_v59, %v2274_v58 }
  0x58   :  { %1552 = vmatpush.bf16.msra.mxu0 %v2399_v20  ;;  %1565 = vmatpush.bf16.msra.mxu1 %v2527_v23  ;;  %v2716_v11 = vld [vmem:[#allocation5 + $0x470] sm:$0xf0]  ;;  %v2591_v14 = vor.u32 %v3284_v6, %v2588_v7  ;;  %v3216_v16 = vld [vmem:[#allocation5 + $0x144] sm:$0xf] }
  0x59   :  { %1578 = vmatpush.bf16.msra.mxu2 %v2655_v24  ;;  %1521 = vmatmul.bf16.vlgmr.msrb.gmra.mxu1 %v3637_v37  ;;  %v2316_v17 = vld [vmem:[#allocation5 + $0x150] sm:$0xf0]  ;;  %v3248_v18 = vld [vmem:[#allocation5 + $0x244] sm:$0xf]  ;;  %v2719_v19 = vor.u32 %v3316_v10, %v2716_v11  ;;  %v2258_v11 = vld [vmem:[#allocation5 + $0xc8] sm:$0xf] }
  0x5a   :  { %1534 = vmatmul.bf16.vlgmr.msrb.gmra.mxu2 %v3633_v33  ;;  %1547 = vmatmul.bf16.vlgmr.msrb.gmra.mxu3 %v3623_v9  ;;  %v2444_v20 = vld [vmem:[#allocation5 + $0x250] sm:$0xf0]  ;;  %v3280_v21 = vld [vmem:[#allocation5 + $0x344] sm:$0xf]  ;;  %v2319_v26 = vor.u32 %v3216_v16, %v2316_v17 }
  0x5b   :  { %1591 = vmatpush.bf16.msra.mxu3 %v2783_v29  ;;  %v2572_v22 = vld [vmem:[#allocation5 + $0x350] sm:$0xf0]  ;;  %v3312_v23 = vld [vmem:[#allocation5 + $0x444] sm:$0xf]  ;;  %v2447_v27 = vor.u32 %v3248_v18, %v2444_v20 }
  0x5c   :  { %1553 = vmatpush.bf16.msra.mxu0 %v2383_v38  ;;  %1566 = vmatpush.bf16.msra.mxu1 %v2511_v39  ;;  %v2700_v24 = vld [vmem:[#allocation5 + $0x450] sm:$0xf0]  ;;  %v2575_v28 = vor.u32 %v3280_v21, %v2572_v22  ;;  %v3212_v29 = vld [vmem:[#allocation5 + $0x124] sm:$0xf] }
  0x5d   :  { %1579 = vmatpush.bf16.msra.mxu2 %v2639_v40  ;;  %v2300_v30 = vld [vmem:[#allocation5 + $0x130] sm:$0xf0]  ;;  %v3244_v31 = vld [vmem:[#allocation5 + $0x224] sm:$0xf]  ;;  %v2703_v32 = vor.u32 %v3312_v23, %v2700_v24  ;;  %v2242_v24 = vld [vmem:[#allocation5 + $0xa8] sm:$0xf] }
  0x5e   :  { %v2428_v34 = vld [vmem:[#allocation5 + $0x230] sm:$0xf0]  ;;  %v3276_v35 = vld [vmem:[#allocation5 + $0x324] sm:$0xf]  ;;  %v2303_v41 = vor.u32 %v3212_v29, %v2300_v30 }
  0x5f   :  { %1592 = vmatpush.bf16.msra.mxu3 %v2767_v44  ;;  %v2556_v38 = vld [vmem:[#allocation5 + $0x330] sm:$0xf0]  ;;  %v3308_v39 = vld [vmem:[#allocation5 + $0x424] sm:$0xf]  ;;  %v2431_v44 = vor.u32 %v3244_v31, %v2428_v34 }
  0x60   :  { %1554 = vmatpush.bf16.msra.mxu0 %v2367_v50  ;;  %1567 = vmatpush.bf16.msra.mxu1 %v2495_v51  ;;  %v2684_v40 = vld [vmem:[#allocation5 + $0x430] sm:$0xf0]  ;;  %v3208_v42 = vld [vmem:[#allocation5 + $0x104] sm:$0xf]  ;;  %v2559_v45 = vor.u32 %v3276_v35, %v2556_v38 }
  0x61   :  { %1580 = vmatpush.bf16.msra.mxu2 %v2623_v52  ;;  %v2284_v43 = vld [vmem:[#allocation5 + $0x110] sm:$0xf0]  ;;  %v3240_v46 = vld [vmem:[#allocation5 + $0x204] sm:$0xf]  ;;  %v2687_v49 = vor.u32 %v3308_v39, %v2684_v40  ;;  %v2226_v40 = vld [vmem:[#allocation5 + $0x88] sm:$0xf] }
  0x62   :  { %v2412_v47 = vld [vmem:[#allocation5 + $0x210] sm:$0xf0]  ;;  %v3272_v48 = vld [vmem:[#allocation5 + $0x304] sm:$0xf] }
  0x63   :  { %1593 = vmatpush.bf16.msra.mxu3 %v2751_v56  ;;  %v2540_v50 = vld [vmem:[#allocation5 + $0x310] sm:$0xf0]  ;;  %v3304_v51 = vld [vmem:[#allocation5 + $0x404] sm:$0xf]  ;;  %v2287_v56 = vor.u32 %v3208_v42, %v2284_v43  ;;  %v2415_v60 = vor.u32 %v3240_v46, %v2412_v47  ;;  %v2354_v42 = vld [vmem:[#allocation5 + $0x188] sm:$0xf] }
  0x64   :  { %1555 = vmatpush.bf16.msra.mxu0 %v2351_v62  ;;  %1568 = vmatpush.bf16.msra.mxu1 %v2479_v63  ;;  %v2668_v52 = vld [vmem:[#allocation5 + $0x410] sm:$0xf0]  ;;  %v3364_v53 = vld [vmem:[#allocation5 + $0x5e4] sm:$0xf]  ;;  %v2543_v61 = vor.u32 %v3272_v48, %v2540_v50  ;;  %v2402_v62 = vld [vmem:[#allocation5 + $0x1e8] sm:$0xf] }
  0x65   :  { %1581 = vmatpush.bf16.msra.mxu2 %v2607_v0  ;;  %v2908_v54 = vld [vmem:[#allocation5 + $0x5f0] sm:$0xf0]  ;;  %v3396_v55 = vld [vmem:[#allocation5 + $0x6e4] sm:$0xf]  ;;  %v3239_v63 = vld [vmem:[#allocation5 + $0x1f4] sm:$0xf0]  ;;  %v2671_v0 = vor.u32 %v3304_v51, %v2668_v52 }
  0x66   :  { %v3036_v57 = vld [vmem:[#allocation5 + $0x6f0] sm:$0xf0]  ;;  %v2911_v1 = vor.u32 %v3364_v53, %v2908_v54  ;;  %v3392_v6 = vld [vmem:[#allocation5 + $0x6c4] sm:$0xf]  ;;  %v2403_v7 = vor.u32 %v3239_v63, %v2402_v62  ;;  %v3227_v43 = vld [vmem:[#allocation5 + $0x194] sm:$0xf0] }
  0x67   :  { %1594 = vmatpush.bf16.msra.mxu3 %v2735_v4  ;;  %v3039_v2 = vor.u32 %v3396_v55, %v3036_v57  ;;  %v3360_v4 = vld [vmem:[#allocation5 + $0x5c4] sm:$0xf]  ;;  %v2892_v5 = vld [vmem:[#allocation5 + $0x5d0] sm:$0xf0]  ;;  %v2355_v50 = vor.u32 %v3227_v43, %v2354_v42  ;;  %v2210_v52 = vld [vmem:[#allocation5 + $0x68] sm:$0xf] }
  0x68   :  { %1556 = vmatpush.bf16.msra.mxu0 %v2335_v12  ;;  %1569 = vmatpush.bf16.msra.mxu1 %v2463_v13  ;;  %v3020_v10 = vld [vmem:[#allocation5 + $0x6d0] sm:$0xf0]  ;;  %v3203_v12 = vld [vmem:[#allocation5 + $0xd4] sm:$0xf0]  ;;  %v2386_v13 = vld [vmem:[#allocation5 + $0x1c8] sm:$0xf]  ;;  %v2895_v16 = vor.u32 %v3360_v4, %v2892_v5 }
  0x69   :  { %1582 = vmatpush.bf16.msra.mxu2 %v2591_v14  ;;  %v3235_v14 = vld [vmem:[#allocation5 + $0x1d4] sm:$0xf0]  ;;  %v3023_v17 = vor.u32 %v3392_v6, %v3020_v10  ;;  %v2259_v18 = vor.u32 %v3203_v12, %v2258_v11  ;;  %v2876_v20 = vld [vmem:[#allocation5 + $0x5b0] sm:$0xf0]  ;;  %v3388_v21 = vld [vmem:[#allocation5 + $0x6a4] sm:$0xf] }
  0x6a   :  { %v2387_v22 = vor.u32 %v3235_v14, %v2386_v13  ;;  %v3004_v23 = vld [vmem:[#allocation5 + $0x6b0] sm:$0xf0]  ;;  %v3384_v35 = vld [vmem:[#allocation5 + $0x684] sm:$0xf]  ;;  %v3191_v53 = vld [vmem:[#allocation5 + $0x74] sm:$0xf0] }
  0x6b   :  { %1595 = vmatpush.bf16.msra.mxu3 %v2719_v19  ;;  %v3356_v19 = vld [vmem:[#allocation5 + $0x5a4] sm:$0xf]  ;;  %v3007_v30 = vor.u32 %v3388_v21, %v3004_v23  ;;  %v2860_v34 = vld [vmem:[#allocation5 + $0x590] sm:$0xf0]  ;;  %v2338_v54 = vld [vmem:[#allocation5 + $0x168] sm:$0xf]  ;;  %v2211_v58 = vor.u32 %v3191_v53, %v2210_v52 }
  0x6c   :  { %1557 = vmatpush.bf16.msra.mxu0 %v2319_v26  ;;  %1570 = vmatpush.bf16.msra.mxu1 %v2447_v27  ;;  %v3199_v26 = vld [vmem:[#allocation5 + $0xb4] sm:$0xf0]  ;;  %v2370_v27 = vld [vmem:[#allocation5 + $0x1a8] sm:$0xf]  ;;  %v2879_v29 = vor.u32 %v3356_v19, %v2876_v20  ;;  %v2988_v39 = vld [vmem:[#allocation5 + $0x690] sm:$0xf0] }
  0x6d   :  { %1583 = vmatpush.bf16.msra.mxu2 %v2575_v28  ;;  %v3231_v28 = vld [vmem:[#allocation5 + $0x1b4] sm:$0xf0]  ;;  %v2243_v31 = vor.u32 %v3199_v26, %v2242_v24  ;;  %v3348_v47 = vld [vmem:[#allocation5 + $0x564] sm:$0xf]  ;;  %v2844_v48 = vld [vmem:[#allocation5 + $0x570] sm:$0xf0] }
  0x6e   :  { %v2371_v38 = vor.u32 %v3231_v28, %v2370_v27  ;;  %v2972_v51 = vld [vmem:[#allocation5 + $0x670] sm:$0xf0]  ;;  %v3223_v55 = vld [vmem:[#allocation5 + $0x174] sm:$0xf0]  ;;  %v3344_v59 = vld [vmem:[#allocation5 + $0x544] sm:$0xf] }
  0x6f   :  { %1596 = vmatpush.bf16.msra.mxu3 %v2703_v32  ;;  %v3352_v32 = vld [vmem:[#allocation5 + $0x584] sm:$0xf]  ;;  %v2339_v62 = vor.u32 %v3223_v55, %v2338_v54  ;;  %v2956_v63 = vld [vmem:[#allocation5 + $0x650] sm:$0xf0]  ;;  %v2178_v14 = vld [vmem:[#allocation5 + $0x28] sm:$0xf] }
  0x70   :  { %1558 = vmatpush.bf16.msra.mxu0 %v2303_v41  ;;  %1571 = vmatpush.bf16.msra.mxu1 %v2431_v44  ;;  %v3195_v41 = vld [vmem:[#allocation5 + $0x94] sm:$0xf0]  ;;  %v2863_v44 = vor.u32 %v3352_v32, %v2860_v34  ;;  %v2812_v10 = vld [vmem:[#allocation5 + $0x530] sm:$0xf0]  ;;  %v3372_v11 = vld [vmem:[#allocation5 + $0x624] sm:$0xf] }
  0x71   :  { %1584 = vmatpush.bf16.msra.mxu2 %v2559_v45  ;;  %v2991_v45 = vor.u32 %v3384_v35, %v2988_v39  ;;  %v2227_v46 = vor.u32 %v3195_v41, %v2226_v40  ;;  %v2940_v13 = vld [vmem:[#allocation5 + $0x630] sm:$0xf0]  ;;  %v3336_v20 = vld [vmem:[#allocation5 + $0x504] sm:$0xf]  ;;  %v2162_v27 = vld [vmem:[#allocation5 + $0x8] sm:$0xf] }
  0x72   :  { %v2796_v21 = vld [vmem:[#allocation5 + $0x510] sm:$0xf0]  ;;  %v3368_v24 = vld [vmem:[#allocation5 + $0x604] sm:$0xf]  ;;  %v2530_v32 = vld [vmem:[#allocation5 + $0x2e8] sm:$0xf] }
  0x73   :  { %1597 = vmatpush.bf16.msra.mxu3 %v2687_v49  ;;  %v3380_v49 = vld [vmem:[#allocation5 + $0x664] sm:$0xf]  ;;  %v2924_v26 = vld [vmem:[#allocation5 + $0x610] sm:$0xf0]  ;;  %v3271_v34 = vld [vmem:[#allocation5 + $0x2f4] sm:$0xf0] }
  0x74   :  { %1559 = vmatpush.bf16.msra.mxu0 %v2287_v56  ;;  %1572 = vmatpush.bf16.msra.mxu1 %v2415_v60  ;;  %v2847_v56 = vor.u32 %v3348_v47, %v2844_v48  ;;  %v2975_v57 = vor.u32 %v3380_v49, %v2972_v51  ;;  %v2828_v60 = vld [vmem:[#allocation5 + $0x550] sm:$0xf0]  ;;  %v2658_v35 = vld [vmem:[#allocation5 + $0x3e8] sm:$0xf]  ;;  %v3303_v39 = vld [vmem:[#allocation5 + $0x3f4] sm:$0xf0]  ;;  %v2927_v42 = vor.u32 %v3368_v24, %v2924_v26 }
  0x75   :  { %1585 = vmatpush.bf16.msra.mxu2 %v2543_v61  ;;  %v3376_v61 = vld [vmem:[#allocation5 + $0x644] sm:$0xf]  ;;  %v2831_v4 = vor.u32 %v3344_v59, %v2828_v60  ;;  %v2786_v40 = vld [vmem:[#allocation5 + $0x4e8] sm:$0xf]  ;;  %v3335_v41 = vld [vmem:[#allocation5 + $0x4f4] sm:$0xf0]  ;;  %v2531_v47 = vor.u32 %v3271_v34, %v2530_v32  ;;  %v2659_v48 = vor.u32 %v3303_v39, %v2658_v35 }
  0x76   :  { %v2959_v5 = vor.u32 %v3376_v61, %v2956_v63  ;;  %v2787_v49 = vor.u32 %v3335_v41, %v2786_v40  ;;  %v3267_v51 = vld [vmem:[#allocation5 + $0x2d4] sm:$0xf0]  ;;  %v2642_v52 = vld [vmem:[#allocation5 + $0x3c8] sm:$0xf] }
  0x77   :  { %1598 = vmatpush.bf16.msra.mxu3 %v2671_v0  ;;  %1560 = vmatmul.bf16.vlgmr.msra.gmra.mxu0 %v3630_v25  ;;  %v2194_v0 = vld [vmem:[#allocation5 + $0x48] sm:$0xf]  ;;  %v3299_v54 = vld [vmem:[#allocation5 + $0x3d4] sm:$0xf0] }
  0x78   :  { %1604 = vmatpush.bf16.msrb.mxu0 %v2911_v1  ;;  %1617 = vmatpush.bf16.msrb.mxu1 %v3039_v2  ;;  %v3187_v1 = vld [vmem:[#allocation5 + $0x54] sm:$0xf0]  ;;  %v2322_v2 = vld [vmem:[#allocation5 + $0x148] sm:$0xf]  ;;  %v2643_v60 = vor.u32 %v3299_v54, %v2642_v52 }
  0x79   :  { %1630 = vmatpush.bf16.msrb.mxu2 %v2275_v3  ;;  %1573 = vmatmul.bf16.vlgmr.msra.gmra.mxu1 %v3621_v8  ;;  %v3219_v3 = vld [vmem:[#allocation5 + $0x154] sm:$0xf0]  ;;  %v2195_v6 = vor.u32 %v3187_v1, %v2194_v0  ;;  %v2770_v55 = vld [vmem:[#allocation5 + $0x4c8] sm:$0xf] }
  0x7a   :  { %1586 = vmatmul.bf16.vlgmr.msra.gmra.mxu2 %v3625_v15  ;;  %1599 = vmatmul.bf16.vlgmr.msra.gmra.mxu3 %v3635_v36  ;;  %v2323_v12 = vor.u32 %v3219_v3, %v2322_v2  ;;  %v3263_v63 = vld [vmem:[#allocation5 + $0x2b4] sm:$0xf0]  ;;  %v2626_v0 = vld [vmem:[#allocation5 + $0x3a8] sm:$0xf] }
  0x7b   :  { %1643 = vmatpush.bf16.msrb.mxu3 %v2403_v7  ;;  %v3340_v7 = vld [vmem:[#allocation5 + $0x524] sm:$0xf]  ;;  %v3295_v2 = vld [vmem:[#allocation5 + $0x3b4] sm:$0xf0]  ;;  %v2754_v3 = vld [vmem:[#allocation5 + $0x4a8] sm:$0xf] }
  0x7c   :  { %1605 = vmatpush.bf16.msrb.mxu0 %v2895_v16  ;;  %1618 = vmatpush.bf16.msrb.mxu1 %v3023_v17  ;;  %v3183_v16 = vld [vmem:[#allocation5 + $0x34] sm:$0xf0]  ;;  %v2306_v17 = vld [vmem:[#allocation5 + $0x128] sm:$0xf]  ;;  %v2815_v19 = vor.u32 %v3340_v7, %v2812_v10  ;;  %v2627_v10 = vor.u32 %v3295_v2, %v2626_v0 }
  0x7d   :  { %1631 = vmatpush.bf16.msrb.mxu2 %v2259_v18  ;;  %v3215_v18 = vld [vmem:[#allocation5 + $0x134] sm:$0xf0]  ;;  %v2179_v23 = vor.u32 %v3183_v16, %v2178_v14  ;;  %v2610_v14 = vld [vmem:[#allocation5 + $0x388] sm:$0xf] }
  0x7e   :  { %v2307_v28 = vor.u32 %v3215_v18, %v2306_v17  ;;  %v3291_v17 = vld [vmem:[#allocation5 + $0x394] sm:$0xf0]  ;;  %v2738_v18 = vld [vmem:[#allocation5 + $0x488] sm:$0xf] }
  0x7f   :  { %1644 = vmatpush.bf16.msrb.mxu3 %v2387_v22  ;;  %v2943_v22 = vor.u32 %v3372_v11, %v2940_v13  ;;  %v3259_v13 = vld [vmem:[#allocation5 + $0x294] sm:$0xf0]  ;;  %v2466_v26 = vld [vmem:[#allocation5 + $0x268] sm:$0xf] }
  0x80   :  { %1606 = vmatpush.bf16.msrb.mxu0 %v2879_v29  ;;  %1619 = vmatpush.bf16.msrb.mxu1 %v3007_v30  ;;  %v3179_v29 = vld [vmem:[#allocation5 + $0x14] sm:$0xf0]  ;;  %v2290_v30 = vld [vmem:[#allocation5 + $0x108] sm:$0xf] }
  0x81   :  { %1632 = vmatpush.bf16.msrb.mxu2 %v2243_v31  ;;  %v3211_v31 = vld [vmem:[#allocation5 + $0x114] sm:$0xf0]  ;;  %v2163_v43 = vor.u32 %v3179_v29, %v2162_v27  ;;  %v2850_v34 = vld [vmem:[#allocation5 + $0x568] sm:$0xf] }
  0x82   :  { %v3255_v27 = vld [vmem:[#allocation5 + $0x274] sm:$0xf0]  ;;  %v2450_v41 = vld [vmem:[#allocation5 + $0x248] sm:$0xf] }
  0x83   :  { %1645 = vmatpush.bf16.msrb.mxu3 %v2371_v38  ;;  %v2799_v38 = vor.u32 %v3336_v20, %v2796_v21  ;;  %v2866_v20 = vld [vmem:[#allocation5 + $0x588] sm:$0xf]  ;;  %v3355_v21 = vld [vmem:[#allocation5 + $0x594] sm:$0xf0] }
  0x84   :  { %1607 = vmatpush.bf16.msrb.mxu0 %v2863_v44  ;;  %1620 = vmatpush.bf16.msrb.mxu1 %v2991_v45  ;;  %v2914_v44 = vld [vmem:[#allocation5 + $0x5e8] sm:$0xf]  ;;  %v3367_v45 = vld [vmem:[#allocation5 + $0x5f4] sm:$0xf0]  ;;  %v2867_v29 = vor.u32 %v3355_v21, %v2866_v20 }
  0x85   :  { %1633 = vmatpush.bf16.msrb.mxu2 %v2227_v46  ;;  %v2291_v46 = vor.u32 %v3211_v31, %v2290_v30  ;;  %v2915_v53 = vor.u32 %v3367_v45, %v2914_v44  ;;  %v3287_v30 = vld [vmem:[#allocation5 + $0x374] sm:$0xf0]  ;;  %v2722_v31 = vld [vmem:[#allocation5 + $0x468] sm:$0xf] }
  0x86   :  { %v3319_v32 = vld [vmem:[#allocation5 + $0x474] sm:$0xf0] }
  0x87   :  { %1646 = vmatpush.bf16.msrb.mxu3 %v2355_v50  ;;  %v2514_v50 = vld [vmem:[#allocation5 + $0x2c8] sm:$0xf]  ;;  %v3351_v35 = vld [vmem:[#allocation5 + $0x574] sm:$0xf0]  ;;  %v2723_v40 = vor.u32 %v3319_v32, %v2722_v31  ;;  %v3201_v31 = vld [vmem:[#allocation5 + $0xcc] sm:$0xf] }
  0x88   :  { %1608 = vmatpush.bf16.msrb.mxu0 %v2847_v56  ;;  %1621 = vmatpush.bf16.msrb.mxu1 %v2975_v57  ;;  %v3331_v56 = vld [vmem:[#allocation5 + $0x4d4] sm:$0xf0]  ;;  %v2898_v57 = vld [vmem:[#allocation5 + $0x5c8] sm:$0xf]  ;;  %v2515_v59 = vor.u32 %v3267_v51, %v2514_v50  ;;  %v2851_v44 = vor.u32 %v3351_v35, %v2850_v34  ;;  %v2260_v34 = vld [vmem:[#allocation5 + $0xd8] sm:$0xf0] }
  0x89   :  { %1634 = vmatpush.bf16.msrb.mxu2 %v2211_v58  ;;  %v3363_v58 = vld [vmem:[#allocation5 + $0x5d4] sm:$0xf0]  ;;  %v2771_v61 = vor.u32 %v3331_v56, %v2770_v55  ;;  %v2562_v55 = vld [vmem:[#allocation5 + $0x328] sm:$0xf]  ;;  %v3233_v35 = vld [vmem:[#allocation5 + $0x1cc] sm:$0xf] }
  0x8a   :  { %v2899_v1 = vor.u32 %v3363_v58, %v2898_v57  ;;  %v3283_v45 = vld [vmem:[#allocation5 + $0x354] sm:$0xf0]  ;;  %v2690_v58 = vld [vmem:[#allocation5 + $0x428] sm:$0xf] }
  0x8b   :  { %1647 = vmatpush.bf16.msrb.mxu3 %v2339_v62  ;;  %v2498_v62 = vld [vmem:[#allocation5 + $0x2a8] sm:$0xf]  ;;  %v3247_v54 = vld [vmem:[#allocation5 + $0x234] sm:$0xf0] }
  0x8c   :  { %1609 = vmatpush.bf16.msrb.mxu0 %v2831_v4  ;;  %1622 = vmatpush.bf16.msrb.mxu1 %v2959_v5  ;;  %v3327_v4 = vld [vmem:[#allocation5 + $0x4b4] sm:$0xf0]  ;;  %v2882_v5 = vld [vmem:[#allocation5 + $0x5a8] sm:$0xf]  ;;  %v2499_v7 = vor.u32 %v3263_v63, %v2498_v62 }
  0x8d   :  { %1635 = vmatpush.bf16.msrb.mxu2 %v2195_v6  ;;  %v3359_v6 = vld [vmem:[#allocation5 + $0x5b4] sm:$0xf0]  ;;  %v2755_v11 = vor.u32 %v3327_v4, %v2754_v3  ;;  %v2418_v63 = vld [vmem:[#allocation5 + $0x208] sm:$0xf] }
  0x8e   :  { %v2883_v16 = vor.u32 %v3359_v6, %v2882_v5  ;;  %v3279_v57 = vld [vmem:[#allocation5 + $0x334] sm:$0xf0]  ;;  %v2546_v3 = vld [vmem:[#allocation5 + $0x308] sm:$0xf] }
  0x8f   :  { %1648 = vmatpush.bf16.msrb.mxu3 %v2323_v12  ;;  %v2482_v12 = vld [vmem:[#allocation5 + $0x288] sm:$0xf]  ;;  %v3243_v0 = vld [vmem:[#allocation5 + $0x214] sm:$0xf0] }
  0x90   :  { %1610 = vmatpush.bf16.msrb.mxu0 %v2815_v19  ;;  %1623 = vmatpush.bf16.msrb.mxu1 %v2943_v22  ;;  %v3323_v19 = vld [vmem:[#allocation5 + $0x494] sm:$0xf0]  ;;  %v2483_v22 = vor.u32 %v3259_v13, %v2482_v12  ;;  %v2674_v5 = vld [vmem:[#allocation5 + $0x408] sm:$0xf] }
  0x91   :  { %1636 = vmatpush.bf16.msrb.mxu2 %v2179_v23  ;;  %v2611_v23 = vor.u32 %v3291_v17, %v2610_v14  ;;  %v2739_v24 = vor.u32 %v3323_v19, %v2738_v18  ;;  %v3275_v4 = vld [vmem:[#allocation5 + $0x314] sm:$0xf0]  ;;  %v3042_v12 = vld [vmem:[#allocation5 + $0x6e8] sm:$0xf]  ;;  %v3205_v14 = vld [vmem:[#allocation5 + $0xec] sm:$0xf] }
  0x92   :  { %v3399_v13 = vld [vmem:[#allocation5 + $0x6f4] sm:$0xf0]  ;;  %v2276_v17 = vld [vmem:[#allocation5 + $0xf8] sm:$0xf0]  ;;  %v3237_v18 = vld [vmem:[#allocation5 + $0x1ec] sm:$0xf]  ;;  %v2547_v20 = vor.u32 %v3275_v4, %v2546_v3 }
  0x93   :  { %1649 = vmatpush.bf16.msrb.mxu3 %v2307_v28  ;;  %v2594_v28 = vld [vmem:[#allocation5 + $0x368] sm:$0xf]  ;;  %v2404_v19 = vld [vmem:[#allocation5 + $0x1f8] sm:$0xf0] }
  0x94   :  { %1611 = vmatpush.bf16.msrb.mxu0 %v2799_v38  ;;  %1624 = vmatpush.bf16.msrb.mxu1 %v2927_v42  ;;  %v2467_v38 = vor.u32 %v3255_v27, %v2466_v26  ;;  %v2595_v39 = vor.u32 %v3287_v30, %v2594_v28  ;;  %v3251_v42 = vld [vmem:[#allocation5 + $0x254] sm:$0xf0]  ;;  %v3043_v26 = vor.u32 %v3399_v13, %v3042_v12  ;;  %v2978_v4 = vld [vmem:[#allocation5 + $0x668] sm:$0xf]  ;;  %v2340_v12 = vld [vmem:[#allocation5 + $0x178] sm:$0xf0] }
  0x95   :  { %1637 = vmatpush.bf16.msrb.mxu2 %v2163_v43  ;;  %v2578_v43 = vld [vmem:[#allocation5 + $0x348] sm:$0xf]  ;;  %v2451_v50 = vor.u32 %v3251_v42, %v2450_v41  ;;  %v2279_v27 = vor.u32 %v3205_v14, %v2276_v17  ;;  %v2407_v28 = vor.u32 %v3237_v18, %v2404_v19  ;;  %v3395_v30 = vld [vmem:[#allocation5 + $0x6d4] sm:$0xf0]  ;;  %v2263_v42 = vor.u32 %v3201_v31, %v2260_v34  ;;  %v3253_v13 = vld [vmem:[#allocation5 + $0x26c] sm:$0xf] }
  0x96   :  { %v2579_v51 = vor.u32 %v3283_v45, %v2578_v43  ;;  %v3391_v45 = vld [vmem:[#allocation5 + $0x6b4] sm:$0xf0]  ;;  %v2468_v14 = vld [vmem:[#allocation5 + $0x278] sm:$0xf0] }
  0x97   :  { %1650 = vmatpush.bf16.msrb.mxu3 %v2291_v46  ;;  %1612 = vmatmul.bf16.vlgmr.msrb.gmra.mxu0 %v3637_v37  ;;  %v2706_v46 = vld [vmem:[#allocation5 + $0x448] sm:$0xf] }
  0x98   :  { %1656 = vmatpush.bf16.msra.mxu0 %v2531_v47  ;;  %1669 = vmatpush.bf16.msra.mxu1 %v2659_v48  ;;  %v3315_v47 = vld [vmem:[#allocation5 + $0x454] sm:$0xf0]  ;;  %v2834_v48 = vld [vmem:[#allocation5 + $0x548] sm:$0xf] }
  0x99   :  { %1682 = vmatpush.bf16.msra.mxu2 %v2787_v49  ;;  %1625 = vmatmul.bf16.vlgmr.msrb.gmra.mxu1 %v3633_v33  ;;  %v3347_v49 = vld [vmem:[#allocation5 + $0x554] sm:$0xf0]  ;;  %v2707_v52 = vor.u32 %v3315_v47, %v2706_v46  ;;  %v3197_v46 = vld [vmem:[#allocation5 + $0xac] sm:$0xf] }
  0x9a   :  { %1638 = vmatmul.bf16.vlgmr.msrb.gmra.mxu2 %v3623_v9  ;;  %1651 = vmatmul.bf16.vlgmr.msrb.gmra.mxu3 %v3630_v25  ;;  %v2835_v56 = vor.u32 %v3347_v49, %v2834_v48  ;;  %v2244_v48 = vld [vmem:[#allocation5 + $0xb8] sm:$0xf0]  ;;  %v3229_v49 = vld [vmem:[#allocation5 + $0x1ac] sm:$0xf] }
  0x9b   :  { %1695 = vmatpush.bf16.msra.mxu3 %v2915_v53  ;;  %v2434_v53 = vld [vmem:[#allocation5 + $0x228] sm:$0xf] }
  0x9c   :  { %1657 = vmatpush.bf16.msra.mxu0 %v2515_v59  ;;  %1670 = vmatpush.bf16.msra.mxu1 %v2643_v60  ;;  %v3311_v59 = vld [vmem:[#allocation5 + $0x434] sm:$0xf0]  ;;  %v2818_v60 = vld [vmem:[#allocation5 + $0x528] sm:$0xf]  ;;  %v2435_v62 = vor.u32 %v3247_v54, %v2434_v53  ;;  %v2247_v54 = vor.u32 %v3197_v46, %v2244_v48  ;;  %v2436_v46 = vld [vmem:[#allocation5 + $0x238] sm:$0xf0] }
  0x9d   :  { %1683 = vmatpush.bf16.msra.mxu2 %v2771_v61  ;;  %v3343_v61 = vld [vmem:[#allocation5 + $0x534] sm:$0xf0]  ;;  %v2691_v2 = vor.u32 %v3311_v59, %v2690_v58  ;;  %v3193_v58 = vld [vmem:[#allocation5 + $0x8c] sm:$0xf] }
  0x9e   :  { %v2819_v6 = vor.u32 %v3343_v61, %v2818_v60  ;;  %v2228_v60 = vld [vmem:[#allocation5 + $0x98] sm:$0xf0]  ;;  %v3225_v61 = vld [vmem:[#allocation5 + $0x18c] sm:$0xf] }
  0x9f   :  { %1696 = vmatpush.bf16.msra.mxu3 %v2899_v1  ;;  %v2563_v1 = vor.u32 %v3279_v57, %v2562_v55  ;;  %v3387_v57 = vld [vmem:[#allocation5 + $0x694] sm:$0xf0] }
  0xa0   :  { %1658 = vmatpush.bf16.msra.mxu0 %v2499_v7  ;;  %1671 = vmatpush.bf16.msra.mxu1 %v2627_v10  ;;  %v3307_v7 = vld [vmem:[#allocation5 + $0x414] sm:$0xf0]  ;;  %v2802_v10 = vld [vmem:[#allocation5 + $0x508] sm:$0xf] }
  0xa1   :  { %1684 = vmatpush.bf16.msra.mxu2 %v2755_v11  ;;  %v3339_v11 = vld [vmem:[#allocation5 + $0x514] sm:$0xf0]  ;;  %v2675_v21 = vor.u32 %v3307_v7, %v2674_v5 }
  0xa2   :  { %v3383_v5 = vld [vmem:[#allocation5 + $0x674] sm:$0xf0] }
  0xa3   :  { %1697 = vmatpush.bf16.msra.mxu3 %v2883_v16  ;;  %v2419_v16 = vor.u32 %v3243_v0, %v2418_v63  ;;  %v3257_v63 = vld [vmem:[#allocation5 + $0x28c] sm:$0xf]  ;;  %v2484_v0 = vld [vmem:[#allocation5 + $0x298] sm:$0xf0] }
  0xa4   :  { %1659 = vmatpush.bf16.msra.mxu0 %v2483_v22  ;;  %1672 = vmatpush.bf16.msra.mxu1 %v2611_v23  ;;  %v3269_v22 = vld [vmem:[#allocation5 + $0x2ec] sm:$0xf]  ;;  %v2532_v23 = vld [vmem:[#allocation5 + $0x2f8] sm:$0xf0]  ;;  %v2487_v7 = vor.u32 %v3257_v63, %v2484_v0 }
  0xa5   :  { %1685 = vmatpush.bf16.msra.mxu2 %v2739_v24  ;;  %v2803_v24 = vor.u32 %v3339_v11, %v2802_v10  ;;  %v2535_v32 = vor.u32 %v3269_v22, %v2532_v23  ;;  %v2212_v10 = vld [vmem:[#allocation5 + $0x78] sm:$0xf0]  ;;  %v3221_v11 = vld [vmem:[#allocation5 + $0x16c] sm:$0xf]  ;;  %v2471_v23 = vor.u32 %v3253_v13, %v2468_v14 }
  0xa6   :  { %v2343_v19 = vor.u32 %v3221_v11, %v2340_v12  ;;  %v3185_v22 = vld [vmem:[#allocation5 + $0x4c] sm:$0xf] }
  0xa7   :  { %1698 = vmatpush.bf16.msra.mxu3 %v2867_v29  ;;  %v3026_v29 = vld [vmem:[#allocation5 + $0x6c8] sm:$0xf]  ;;  %v3333_v63 = vld [vmem:[#allocation5 + $0x4ec] sm:$0xf] }
  0xa8   :  { %1660 = vmatpush.bf16.msra.mxu0 %v2467_v38  ;;  %1673 = vmatpush.bf16.msra.mxu1 %v2595_v39  ;;  %v2388_v38 = vld [vmem:[#allocation5 + $0x1d8] sm:$0xf0]  ;;  %v3265_v39 = vld [vmem:[#allocation5 + $0x2cc] sm:$0xf]  ;;  %v3027_v41 = vor.u32 %v3395_v30, %v3026_v29 }
  0xa9   :  { %1686 = vmatpush.bf16.msra.mxu2 %v2723_v40  ;;  %v2516_v40 = vld [vmem:[#allocation5 + $0x2d8] sm:$0xf0]  ;;  %v2391_v43 = vor.u32 %v3233_v35, %v2388_v38  ;;  %v2946_v35 = vld [vmem:[#allocation5 + $0x628] sm:$0xf]  ;;  %v3375_v38 = vld [vmem:[#allocation5 + $0x634] sm:$0xf0] }
  0xaa   :  { %v2519_v47 = vor.u32 %v3265_v39, %v2516_v40  ;;  %v2452_v29 = vld [vmem:[#allocation5 + $0x258] sm:$0xf0]  ;;  %v3181_v39 = vld [vmem:[#allocation5 + $0x2c] sm:$0xf]  ;;  %v2947_v48 = vor.u32 %v3375_v38, %v2946_v35 }
  0xab   :  { %1699 = vmatpush.bf16.msra.mxu3 %v2851_v44  ;;  %v3010_v44 = vld [vmem:[#allocation5 + $0x6a8] sm:$0xf]  ;;  %v2628_v35 = vld [vmem:[#allocation5 + $0x3b8] sm:$0xf0]  ;;  %v3325_v38 = vld [vmem:[#allocation5 + $0x4ac] sm:$0xf] }
  0xac   :  { %1661 = vmatpush.bf16.msra.mxu0 %v2451_v50  ;;  %1674 = vmatpush.bf16.msra.mxu1 %v2579_v51  ;;  %v2372_v50 = vld [vmem:[#allocation5 + $0x1b8] sm:$0xf0]  ;;  %v3261_v51 = vld [vmem:[#allocation5 + $0x2ac] sm:$0xf]  ;;  %v3011_v53 = vor.u32 %v3391_v45, %v3010_v44 }
  0xad   :  { %1687 = vmatpush.bf16.msra.mxu2 %v2707_v52  ;;  %v2500_v52 = vld [vmem:[#allocation5 + $0x2b8] sm:$0xf0]  ;;  %v2375_v55 = vor.u32 %v3229_v49, %v2372_v50  ;;  %v3245_v45 = vld [vmem:[#allocation5 + $0x22c] sm:$0xf]  ;;  %v2930_v49 = vld [vmem:[#allocation5 + $0x608] sm:$0xf] }
  0xae   :  { %v2503_v59 = vor.u32 %v3261_v51, %v2500_v52  ;;  %v3371_v50 = vld [vmem:[#allocation5 + $0x614] sm:$0xf0] }
  0xaf   :  { %1700 = vmatpush.bf16.msra.mxu3 %v2835_v56  ;;  %v2994_v56 = vld [vmem:[#allocation5 + $0x688] sm:$0xf]  ;;  %v2931_v0 = vor.u32 %v3371_v50, %v2930_v49  ;;  %v3289_v50 = vld [vmem:[#allocation5 + $0x38c] sm:$0xf] }
  0xb0   :  { %1662 = vmatpush.bf16.msra.mxu0 %v2435_v62  ;;  %1675 = vmatpush.bf16.msra.mxu1 %v2563_v1  ;;  %v2356_v62 = vld [vmem:[#allocation5 + $0x198] sm:$0xf0]  ;;  %v2995_v1 = vor.u32 %v3387_v57, %v2994_v56  ;;  %v3209_v56 = vld [vmem:[#allocation5 + $0x10c] sm:$0xf]  ;;  %v2439_v57 = vor.u32 %v3245_v45, %v2436_v46 }
  0xb1   :  { %1688 = vmatpush.bf16.msra.mxu2 %v2691_v2  ;;  %v2231_v2 = vor.u32 %v3193_v58, %v2228_v60  ;;  %v2359_v3 = vor.u32 %v3225_v61, %v2356_v62  ;;  %v2292_v58 = vld [vmem:[#allocation5 + $0x118] sm:$0xf0]  ;;  %v3301_v61 = vld [vmem:[#allocation5 + $0x3ec] sm:$0xf] }
  0xb2   :  { %v2420_v60 = vld [vmem:[#allocation5 + $0x218] sm:$0xf0] }
  0xb3   :  { %1701 = vmatpush.bf16.msra.mxu3 %v2819_v6  ;;  %v3189_v6 = vld [vmem:[#allocation5 + $0x6c] sm:$0xf]  ;;  %v3655_v17 = vpop.f32.mrf.mxu0  ;;  %v2660_v62 = vld [vmem:[#allocation5 + $0x3f8] sm:$0xf0] }
  0xb4   :  { %1663 = vmatpush.bf16.msra.mxu0 %v2419_v16  ;;  %1676 = vmatpush.bf16.msra.mxu1 %v2547_v20  ;;  %v2979_v16 = vor.u32 %v3383_v5, %v2978_v4  ;;  %v2215_v18 = vor.u32 %v3189_v6, %v2212_v10  ;;  %v2962_v20 = vld [vmem:[#allocation5 + $0x648] sm:$0xf]  ;;  %v2295_v6 = vor.u32 %v3209_v56, %v2292_v58  ;;  %v3044_v10 = vld [vmem:[#allocation5 + $0x6f8] sm:$0xf0]  ;;  %v3385_v56 = vld [vmem:[#allocation5 + $0x68c] sm:$0xf] }
  0xb5   :  { %1689 = vmatpush.bf16.msra.mxu2 %v2675_v21  ;;  %v3379_v21 = vld [vmem:[#allocation5 + $0x654] sm:$0xf0]  ;;  %v2663_v12 = vor.u32 %v3301_v61, %v2660_v62  ;;  %v3012_v45 = vld [vmem:[#allocation5 + $0x6b8] sm:$0xf0]  ;;  %v3285_v61 = vld [vmem:[#allocation5 + $0x36c] sm:$0xf] }
  0xb6   :  { %v2963_v30 = vor.u32 %v3379_v21, %v2962_v20  ;;  %v3329_v20 = vld [vmem:[#allocation5 + $0x4cc] sm:$0xf]  ;;  %v2596_v62 = vld [vmem:[#allocation5 + $0x378] sm:$0xf0] }
  0xb7   :  { %1702 = vmatpush.bf16.msra.mxu3 %v2803_v24  ;;  %1664 = vmatmul.bf16.vlgmr.msra.gmra.mxu0 %v3621_v8  ;;  %v2196_v24 = vld [vmem:[#allocation5 + $0x58] sm:$0xf0] }
  0xb8   :  { %1708 = vmatpush.bf16.msrb.mxu0 %v3043_v26  ;;  %1721 = vmatpush.bf16.msrb.mxu1 %v2279_v27  ;;  %v3217_v26 = vld [vmem:[#allocation5 + $0x14c] sm:$0xf]  ;;  %v2324_v27 = vld [vmem:[#allocation5 + $0x158] sm:$0xf0] }
  0xb9   :  { %1734 = vmatpush.bf16.msrb.mxu2 %v2407_v28  ;;  %1677 = vmatmul.bf16.vlgmr.msra.gmra.mxu1 %v3625_v15  ;;  %v3249_v28 = vld [vmem:[#allocation5 + $0x24c] sm:$0xf]  ;;  %v2327_v34 = vor.u32 %v3217_v26, %v2324_v27  ;;  %v2900_v26 = vld [vmem:[#allocation5 + $0x5d8] sm:$0xf0] }
  0xba   :  { %1690 = vmatmul.bf16.vlgmr.msra.gmra.mxu2 %v3635_v36  ;;  %1703 = vmatmul.bf16.vlgmr.msra.gmra.mxu3 %v3637_v37  ;;  %v2455_v40 = vor.u32 %v3249_v28, %v2452_v29  ;;  %v3393_v27 = vld [vmem:[#allocation5 + $0x6cc] sm:$0xf]  ;;  %v3028_v28 = vld [vmem:[#allocation5 + $0x6d8] sm:$0xf0] }
  0xbb   :  { %1747 = vmatpush.bf16.msrb.mxu3 %v2535_v32  ;;  %v2199_v32 = vor.u32 %v3185_v22, %v2196_v24  ;;  %v3659_v44 = vpop.f32.mrf.mxu2  ;;  %v1459_v51 = vpop.f32.mrf.mxu0  ;;  %v3361_v24 = vld [vmem:[#allocation5 + $0x5cc] sm:$0xf] }
  0xbc   :  { %1709 = vmatpush.bf16.msrb.mxu0 %v3027_v41  ;;  %1722 = vmatpush.bf16.msrb.mxu1 %v2263_v42  ;;  %v2180_v41 = vld [vmem:[#allocation5 + $0x38] sm:$0xf0]  ;;  %v3213_v42 = vld [vmem:[#allocation5 + $0x12c] sm:$0xf] }
  0xbd   :  { %1735 = vmatpush.bf16.msrb.mxu2 %v2391_v43  ;;  %v2308_v43 = vld [vmem:[#allocation5 + $0x138] sm:$0xf0]  ;;  %v2183_v52 = vor.u32 %v3181_v39, %v2180_v41  ;;  %v3031_v39 = vor.u32 %v3393_v27, %v3028_v28  ;;  %v3357_v41 = vld [vmem:[#allocation5 + $0x5ac] sm:$0xf] }
  0xbe   :  { %v2612_v51 = vld [vmem:[#allocation5 + $0x398] sm:$0xf0] }
  0xbf   :  { %1748 = vmatpush.bf16.msrb.mxu3 %v2519_v47 }
  0xc0   :  { %1710 = vmatpush.bf16.msrb.mxu0 %v3011_v53  ;;  %1723 = vmatpush.bf16.msrb.mxu1 %v2247_v54  ;;  %v3657_v31 = vpop.f32.mrf.mxu1  ;;  %v2311_v53 = vor.u32 %v3213_v42, %v2308_v43  ;;  %v3177_v54 = vld [vmem:[#allocation5 + $0xc] sm:$0xf]  ;;  %v2884_v42 = vld [vmem:[#allocation5 + $0x5b8] sm:$0xf0] }
  0xc1   :  { %1736 = vmatpush.bf16.msrb.mxu2 %v2375_v55  ;;  %v2164_v55 = vld [vmem:[#allocation5 + $0x18] sm:$0xf0]  ;;  %v3389_v43 = vld [vmem:[#allocation5 + $0x6ac] sm:$0xf]  ;;  %v2887_v49 = vor.u32 %v3357_v41, %v2884_v42 }
  0xc2   :  { %v2167_v5 = vor.u32 %v3177_v54, %v2164_v55  ;;  %v2740_v54 = vld [vmem:[#allocation5 + $0x498] sm:$0xf0]  ;;  %v3353_v55 = vld [vmem:[#allocation5 + $0x58c] sm:$0xf] }
  0xc3   :  { %1749 = vmatpush.bf16.msrb.mxu3 %v2503_v59  ;;  %v3241_v59 = vld [vmem:[#allocation5 + $0x20c] sm:$0xf]  ;;  %v1485_v13 = vpop.f32.mrf.mxu2  ;;  %v2948_v42 = vld [vmem:[#allocation5 + $0x638] sm:$0xf0] }
  0xc4   :  { %1711 = vmatpush.bf16.msrb.mxu0 %v2995_v1  ;;  %1724 = vmatpush.bf16.msrb.mxu1 %v2231_v2  ;;  %v2788_v1 = vld [vmem:[#allocation5 + $0x4f8] sm:$0xf0]  ;;  %v3365_v2 = vld [vmem:[#allocation5 + $0x5ec] sm:$0xf]  ;;  %v2423_v11 = vor.u32 %v3241_v59, %v2420_v60 }
  0xc5   :  { %1737 = vmatpush.bf16.msrb.mxu2 %v2359_v3  ;;  %v3661_v47 = vpop.f32.mrf.mxu3  ;;  %v2916_v3 = vld [vmem:[#allocation5 + $0x5f8] sm:$0xf0]  ;;  %v2791_v14 = vor.u32 %v3333_v63, %v2788_v1  ;;  %v3317_v63 = vld [vmem:[#allocation5 + $0x46c] sm:$0xf] }
  0xc6   :  { %v2724_v1 = vld [vmem:[#allocation5 + $0x478] sm:$0xf0]  ;;  %v3313_v13 = vld [vmem:[#allocation5 + $0x44c] sm:$0xf] }
  0xc7   :  { %1750 = vmatpush.bf16.msrb.mxu3 %v2487_v7  ;;  %v3397_v7 = vld [vmem:[#allocation5 + $0x6ec] sm:$0xf] }
  0xc8   :  { %1712 = vmatpush.bf16.msrb.mxu0 %v2979_v16  ;;  %1725 = vmatpush.bf16.msrb.mxu1 %v2215_v18  ;;  %v1472_v4 = vpop.f32.mrf.mxu1  ;;  %v2919_v16 = vor.u32 %v3365_v2, %v2916_v3  ;;  %v3297_v18 = vld [vmem:[#allocation5 + $0x3cc] sm:$0xf]  ;;  %v3047_v22 = vor.u32 %v3397_v7, %v3044_v10  ;;  %v2852_v3 = vld [vmem:[#allocation5 + $0x578] sm:$0xf0]  ;;  %v2727_v7 = vor.u32 %v3317_v63, %v2724_v1 }
  0xc9   :  { %1738 = vmatpush.bf16.msrb.mxu2 %v2343_v19  ;;  %v2644_v19 = vld [vmem:[#allocation5 + $0x3d8] sm:$0xf0]  ;;  %v3349_v2 = vld [vmem:[#allocation5 + $0x56c] sm:$0xf] }
  0xca   :  { %v2647_v29 = vor.u32 %v3297_v18, %v2644_v19  ;;  %v3381_v4 = vld [vmem:[#allocation5 + $0x66c] sm:$0xf]  ;;  %v2855_v10 = vor.u32 %v3349_v2, %v2852_v3  ;;  %v2708_v18 = vld [vmem:[#allocation5 + $0x458] sm:$0xf0]  ;;  %v3406_v3 = vld [vmem:[#allocation8 + $0x30] sm:$0xff] }
  0xcb   :  { %1751 = vmatpush.bf16.msrb.mxu3 %v2471_v23  ;;  %v2772_v23 = vld [vmem:[#allocation5 + $0x4d8] sm:$0xf0]  ;;  %v3345_v19 = vld [vmem:[#allocation5 + $0x54c] sm:$0xf]  ;;  %v2711_v28 = vor.u32 %v3313_v13, %v2708_v18  ;;  %v3402_v18 = vld [vmem:[#allocation8 + $0x10] sm:$0xff] }
  0xcc   :  { %1713 = vmatpush.bf16.msrb.mxu0 %v2963_v30  ;;  %1726 = vmatpush.bf16.msrb.mxu1 %v2199_v32  ;;  %v2775_v30 = vor.u32 %v3329_v20, %v2772_v23  ;;  %v2903_v32 = vor.u32 %v3361_v24, %v2900_v26  ;;  %v2836_v20 = vld [vmem:[#allocation5 + $0x558] sm:$0xf0]  ;;  %v3373_v41 = vld [vmem:[#allocation5 + $0x62c] sm:$0xf] }
  0xcd   :  { %1739 = vmatpush.bf16.msrb.mxu2 %v2327_v34  ;;  %v1498_v21 = vpop.f32.mrf.mxu3  ;;  %v3293_v34 = vld [vmem:[#allocation5 + $0x3ac] sm:$0xf]  ;;  %v3415_v2 = vld [vmem:[#allocation8 + $0x78] sm:$0xff] }
  0xce   :  { %v2631_v46 = vor.u32 %v3293_v34, %v2628_v35  ;;  %v3377_v21 = vld [vmem:[#allocation5 + $0x64c] sm:$0xf] }
  0xcf   :  { %1752 = vmatpush.bf16.msrb.mxu3 %v2455_v40  ;;  %v2756_v40 = vld [vmem:[#allocation5 + $0x4b8] sm:$0xf0]  ;;  %v3309_v34 = vld [vmem:[#allocation5 + $0x42c] sm:$0xf] }
  0xd0   :  { %1714 = vmatpush.bf16.msrb.mxu0 %v2947_v48  ;;  %1727 = vmatpush.bf16.msrb.mxu1 %v2183_v52  ;;  %v2759_v48 = vor.u32 %v3325_v38, %v2756_v40  ;;  %v3321_v52 = vld [vmem:[#allocation5 + $0x48c] sm:$0xf]  ;;  %v2692_v38 = vld [vmem:[#allocation5 + $0x438] sm:$0xf0] }
  0xd1   :  { %1740 = vmatpush.bf16.msrb.mxu2 %v2311_v53  ;;  %v3015_v53 = vor.u32 %v3389_v43, %v3012_v45  ;;  %v2820_v40 = vld [vmem:[#allocation5 + $0x538] sm:$0xf0]  ;;  %v3675_v43 = vld [vmem:[#allocation7] sm:$0xf] }
  0xd3   :  { %1753 = vmatpush.bf16.msrb.mxu3 %v2439_v57  ;;  %v2996_v57 = vld [vmem:[#allocation5 + $0x698] sm:$0xf0] }
  0xd4   :  { %1715 = vmatpush.bf16.msrb.mxu0 %v2931_v0  ;;  %1728 = vmatpush.bf16.msrb.mxu1 %v2167_v5  ;;  %v3667_v58 = vpop.f32.mrf.mxu0  ;;  %v2999_v0 = vor.u32 %v3385_v56, %v2996_v57  ;;  %v2980_v5 = vld [vmem:[#allocation5 + $0x678] sm:$0xf0]  ;;  %v320_v56 = vperm.slane %v3675_v43, 0  ;;  %v3369_v57 = vld [vmem:[#allocation5 + $0x60c] sm:$0xf] }
  0xd5   :  { %1741 = vmatpush.bf16.msrb.mxu2 %v2295_v6  ;;  %v2599_v6 = vor.u32 %v3285_v61, %v2596_v62 }
  0xd6   :  { %v3669_v59 = vpop.f32.mrf.mxu1  ;;  %v1458_v1 = vadd.f32 %v3655_v17, %v320_v56  ;;  %v3405_v17 = vld [vmem:[#allocation8 + $0x28] sm:$0xff]  ;;  %v3418_v56 = vld [vmem:[#allocation8 + $0x90] sm:$0xff] }
  0xd7   :  { %1754 = vmatpush.bf16.msrb.mxu3 %v2423_v11  ;;  %1716 = vmatmul.bf16.vlgmr.msrb.gmra.mxu0 %v3633_v33  ;;  %v3281_v11 = vld [vmem:[#allocation5 + $0x34c] sm:$0xf] }
  0xd8   :  { %1760 = vmatpush.bf16.msra.mxu0 %v2663_v12  ;;  %1773 = vmatpush.bf16.msra.mxu1 %v2791_v14  ;;  %v2580_v12 = vld [vmem:[#allocation5 + $0x358] sm:$0xf0] }
  0xd9   :  { %1786 = vmatpush.bf16.msra.mxu2 %v2919_v16  ;;  %1729 = vmatmul.bf16.vlgmr.msrb.gmra.mxu1 %v3623_v9  ;;  %v2743_v9 = vor.u32 %v3321_v52, %v2740_v54  ;;  %v2983_v16 = vor.u32 %v3381_v4, %v2980_v5  ;;  %v2583_v24 = vor.u32 %v3281_v11, %v2580_v12  ;;  %v2676_v54 = vld [vmem:[#allocation5 + $0x418] sm:$0xf0]  ;;  %v3414_v5 = vld [vmem:[#allocation8 + $0x70] sm:$0xff]  ;;  %v3412_v12 = vld [vmem:[#allocation8 + $0x60] sm:$0xff] }
  0xda   :  { %1742 = vmatmul.bf16.vlgmr.msrb.gmra.mxu2 %v3630_v25  ;;  %1755 = vmatmul.bf16.vlgmr.msrb.gmra.mxu3 %v3621_v8  ;;  %v2868_v25 = vld [vmem:[#allocation5 + $0x598] sm:$0xf0]  ;;  %v2615_v8 = vor.u32 %v3289_v50, %v2612_v51  ;;  %v3305_v51 = vld [vmem:[#allocation5 + $0x40c] sm:$0xf]  ;;  %v1471_v4 = vadd.f32 %v3657_v31, %v1458_v1 }
  0xdb   :  { %1799 = vmatpush.bf16.msra.mxu3 %v3047_v22  ;;  %v2871_v60 = vor.u32 %v3353_v55, %v2868_v25  ;;  %v2964_v22 = vld [vmem:[#allocation5 + $0x658] sm:$0xf0]  ;;  %v3337_v55 = vld [vmem:[#allocation5 + $0x50c] sm:$0xf]  ;;  %v2679_v61 = vor.u32 %v3305_v51, %v2676_v54  ;;  %v3420_v51 = vld [vmem:[#allocation8 + $0xa0] sm:$0xff] }
  0xdc   :  { %1761 = vmatpush.bf16.msra.mxu0 %v2647_v29  ;;  %1774 = vmatpush.bf16.msra.mxu1 %v2775_v30  ;;  %v1511_v26 = vpop.f32.mrf.mxu0  ;;  %v2839_v29 = vor.u32 %v3345_v19, %v2836_v20  ;;  %v3277_v30 = vld [vmem:[#allocation5 + $0x32c] sm:$0xf]  ;;  %v2967_v35 = vor.u32 %v3377_v21, %v2964_v22  ;;  %v2548_v50 = vld [vmem:[#allocation5 + $0x318] sm:$0xf0] }
  0xdd   :  { %1787 = vmatpush.bf16.msra.mxu2 %v2903_v32  ;;  %v3671_v14 = vpop.f32.mrf.mxu2  ;;  %v3673_v23 = vpop.f32.mrf.mxu3  ;;  %v2564_v32 = vld [vmem:[#allocation5 + $0x338] sm:$0xf0] }
  0xde   :  { %v1524_v27 = vpop.f32.mrf.mxu1  ;;  %v2567_v45 = vor.u32 %v3277_v30, %v2564_v32  ;;  %v2804_v25 = vld [vmem:[#allocation5 + $0x518] sm:$0xf0]  ;;  %v3400_v32 = vld [vmem:[#allocation8] sm:$0xff] }
  0xdf   :  { %1800 = vmatpush.bf16.msra.mxu3 %v3031_v39  ;;  %v3341_v39 = vld [vmem:[#allocation5 + $0x52c] sm:$0xf]  ;;  %v2807_v62 = vor.u32 %v3337_v55, %v2804_v25  ;;  %v3423_v26 = vld [vmem:[#allocation8 + $0xb8] sm:$0xff] }
  0xe0   :  { %1762 = vmatpush.bf16.msra.mxu0 %v2631_v46  ;;  %1775 = vmatpush.bf16.msra.mxu1 %v2759_v48  ;;  %v2695_v46 = vor.u32 %v3309_v34, %v2692_v38  ;;  %v2823_v48 = vor.u32 %v3341_v39, %v2820_v40  ;;  %v3409_v27 = vld [vmem:[#allocation8 + $0x48] sm:$0xff]  ;;  %v3419_v55 = vld [vmem:[#allocation8 + $0x98] sm:$0xff] }
  0xe1   :  { %1788 = vmatpush.bf16.msra.mxu2 %v2887_v49  ;;  %v3273_v49 = vld [vmem:[#allocation5 + $0x30c] sm:$0xf]  ;;  %v3431_v1 = vld [vmem:[#allocation8 + $0xf8] sm:$0xff] }
  0xe3   :  { %1801 = vmatpush.bf16.msra.mxu3 %v3015_v53  ;;  %v2951_v53 = vor.u32 %v3373_v41, %v2948_v42 }
  0xe4   :  { %1763 = vmatpush.bf16.msra.mxu0 %v2615_v8  ;;  %1776 = vmatpush.bf16.msra.mxu1 %v2743_v9  ;;  %v2932_v8 = vld [vmem:[#allocation5 + $0x618] sm:$0xf0] }
  0xe5   :  { %1789 = vmatpush.bf16.msra.mxu2 %v2871_v60  ;;  %v1537_v52 = vpop.f32.mrf.mxu2  ;;  %v1550_v9 = vpop.f32.mrf.mxu3  ;;  %v2551_v60 = vor.u32 %v3273_v49, %v2548_v50  ;;  %v2935_v63 = vor.u32 %v3369_v57, %v2932_v8  ;;  %v3417_v8 = vld [vmem:[#allocation8 + $0x88] sm:$0xff] }
  0xe7   :  { %1802 = vmatpush.bf16.msra.mxu3 %v2999_v0  ;;  %v3407_v0 = vld [vmem:[#allocation8 + $0x38] sm:$0xff] }
  0xe8   :  { %1764 = vmatpush.bf16.msra.mxu0 %v2599_v6  ;;  %1777 = vmatpush.bf16.msra.mxu1 %v2727_v7  ;;  %v1484_v6 = vadd.f32 %v3659_v44, %v1471_v4  ;;  %v3413_v7 = vld [vmem:[#allocation8 + $0x68] sm:$0xff]  ;;  %v321_v44 = vperm.slane %v3675_v43, 1 }
  0xe9   :  { %1790 = vmatpush.bf16.msra.mxu2 %v2855_v10  ;;  %v3404_v10 = vld [vmem:[#allocation8 + $0x20] sm:$0xff] }
  0xea   :  { %v1497_v31 = vadd.f32 %v3661_v47, %v1484_v6  ;;  %v3410_v47 = vld [vmem:[#allocation8 + $0x50] sm:$0xff]  ;;  %v1549_v22 = vadd.f32 %v3673_v23, %v321_v44 }
  0xeb   :  { %1803 = vmatpush.bf16.msra.mxu3 %v2983_v16 }
  0xec   :  { %1765 = vmatpush.bf16.msra.mxu0 %v2583_v24  ;;  %1778 = vmatpush.bf16.msra.mxu1 %v2711_v28  ;;  %v3401_v24 = vld [vmem:[#allocation8 + $0x8] sm:$0xff] }
  0xed   :  { %1791 = vmatpush.bf16.msra.mxu2 %v2839_v29 }
  0xef   :  { %1804 = vmatpush.bf16.msra.mxu3 %v2967_v35 }
  0xf0   :  { %1766 = vmatpush.bf16.msra.mxu0 %v2567_v45  ;;  %1779 = vmatpush.bf16.msra.mxu1 %v2695_v46 }
  0xf1   :  { %1792 = vmatpush.bf16.msra.mxu2 %v2823_v48  ;;  %v3421_v48 = vld [vmem:[#allocation8 + $0xa8] sm:$0xff] }
  0xf3   :  { %1805 = vmatpush.bf16.msra.mxu3 %v2951_v53 }
  0xf4   :  { %1767 = vmatpush.bf16.msra.mxu0 %v2551_v60  ;;  %1780 = vmatpush.bf16.msra.mxu1 %v2679_v61  ;;  %v1561_v11 = vpop.f32.mrf.mxu0  ;;  %v3416_v61 = vld [vmem:[#allocation8 + $0x80] sm:$0xff] }
  0xf5   :  { %1793 = vmatpush.bf16.msra.mxu2 %v2807_v62  ;;  %v1562_v30 = vadd.f32 %v1561_v11, %v1549_v22  ;;  %v322_v62 = vperm.slane %v3675_v43, 2 }
  0xf7   :  { %1806 = vmatpush.bf16.msra.mxu3 %v2935_v63  ;;  %1768 = vmatmul.bf16.vlgmr.msra.gmra.mxu0 %v3625_v15  ;;  %v1574_v15 = vpop.f32.mrf.mxu1 }
  0xf8   :  { %2080 = vmatpush.bf16.msrb.mxu0 %v3407_v0  ;;  %2093 = vmatpush.bf16.msrb.mxu1 %v3415_v2  ;;  %v1575_v35 = vadd.f32 %v1574_v15, %v1562_v30 }
  0xf9   :  { %1781 = vmatmul.bf16.vlgmr.msra.gmra.mxu1 %v3635_v36  ;;  %1794 = vmatmul.bf16.vlgmr.msra.gmra.mxu2 %v3637_v37  ;;  %v3403_v36 = vld [vmem:[#allocation8 + $0x18] sm:$0xff]  ;;  %v1510_v37 = vadd.f32 %v3667_v58, %v1497_v31  ;;  %v3428_v31 = vld [vmem:[#allocation8 + $0xe0] sm:$0xff] }
  0xfa   :  { %1807 = vmatmul.bf16.vlgmr.msra.gmra.mxu3 %v3633_v33  ;;  %v3411_v33 = vld [vmem:[#allocation8 + $0x58] sm:$0xff]  ;;  %2106 = vmatpush.bf16.msrb.mxu2 %v3423_v26 }
  0xfb   :  { %v1523_v20 = vadd.f32 %v3669_v59, %v1510_v37  ;;  %v3408_v59 = vld [vmem:[#allocation8 + $0x40] sm:$0xff]  ;;  %2119 = vmatpush.bf16.msrb.mxu3 %v3431_v1 }
  0xfc   :  { %2081 = vmatpush.bf16.msrb.mxu0 %v3406_v3  ;;  %2094 = vmatpush.bf16.msrb.mxu1 %v3414_v5  ;;  %v1563_v19 = vpop.f32.mrf.mxu0  ;;  %v3430_v5 = vld [vmem:[#allocation8 + $0xf0] sm:$0xff] }
  0xfd   :  { %v1587_v13 = vpop.f32.mrf.mxu2  ;;  %v1600_v16 = vpop.f32.mrf.mxu3  ;;  %v1536_v58 = vadd.f32 %v3671_v14, %v1523_v20  ;;  %v3422_v14 = vld [vmem:[#allocation8 + $0xb0] sm:$0xff]  ;;  %v3425_v20 = vld [vmem:[#allocation8 + $0xc8] sm:$0xff] }
  0xfe   :  { %v1588_v23 = vadd.f32 %v1587_v13, %v1575_v35  ;;  %2107 = vmatpush.bf16.msrb.mxu2 %v3422_v14 }
  0xff   :  { %v1576_v21 = vpop.f32.mrf.mxu1  ;;  %v1812_v34 = vmax.f32 %v1536_v58, 0.0  ;;  %2120 = vmatpush.bf16.msrb.mxu3 %v3430_v5 }
 0x100   :  { %2082 = vmatpush.bf16.msrb.mxu0 %v3405_v17  ;;  %2095 = vmatpush.bf16.msrb.mxu1 %v3413_v7  ;;  %v1601_v39 = vadd.f32 %v1600_v16, %v1588_v23  ;;  %v3429_v7 = vld [vmem:[#allocation8 + $0xe8] sm:$0xff] }
 0x101   :  { %v1816_v38 = vpack.c.bf16 %v1812_v34, %v1812_v34 }
 0x102   :  { %2108 = vmatpush.bf16.msrb.mxu2 %v3421_v48 }
 0x103   :  { %2121 = vmatpush.bf16.msrb.mxu3 %v3429_v7 }
 0x104   :  { %2083 = vmatpush.bf16.msrb.mxu0 %v3404_v10  ;;  %2096 = vmatpush.bf16.msrb.mxu1 %v3412_v12 }
 0x105   :  { %v1589_v28 = vpop.f32.mrf.mxu2  ;;  %v1602_v29 = vpop.f32.mrf.mxu3 }
 0x106   :  { %2109 = vmatpush.bf16.msrb.mxu2 %v3420_v51  ;;  %v323_v28 = vperm.slane %v3675_v43, 3  ;;  %v3441_v51 = vld [vmem:[%s3703_s4] ss:$0 sm:$0xff] }
 0x107   :  { %2122 = vmatpush.bf16.msrb.mxu3 %v3428_v31 }
 0x108   :  { %2084 = vmatpush.bf16.msrb.mxu0 %v3403_v36  ;;  %2097 = vmatpush.bf16.msrb.mxu1 %v3411_v33  ;;  %v3427_v36 = vld [vmem:[#allocation8 + $0xd8] sm:$0xff]  ;;  %v3426_v33 = vld [vmem:[#allocation8 + $0xd0] sm:$0xff] }
 0x10a   :  { %2110 = vmatpush.bf16.msrb.mxu2 %v3419_v55 }
 0x10b   :  { %2123 = vmatpush.bf16.msrb.mxu3 %v3427_v36 }
 0x10c   :  { %2085 = vmatpush.bf16.msrb.mxu0 %v3402_v18  ;;  %2098 = vmatpush.bf16.msrb.mxu1 %v3410_v47 }
 0x10e   :  { %2111 = vmatpush.bf16.msrb.mxu2 %v3418_v56 }
 0x10f   :  { %2124 = vmatpush.bf16.msrb.mxu3 %v3426_v33 }
 0x110   :  { %2086 = vmatpush.bf16.msrb.mxu0 %v3401_v24  ;;  %2099 = vmatpush.bf16.msrb.mxu1 %v3409_v27  ;;  %v3424_v24 = vld [vmem:[#allocation8 + $0xc0] sm:$0xff] }
 0x112   :  { %2112 = vmatpush.bf16.msrb.mxu2 %v3417_v8 }
 0x113   :  { %2125 = vmatpush.bf16.msrb.mxu3 %v3425_v20 }
 0x114   :  { %2087 = vmatpush.bf16.msrb.mxu0 %v3400_v32  ;;  %2100 = vmatpush.bf16.msrb.mxu1 %v3408_v59  ;;  %v1613_v40 = vpop.f32.mrf.mxu0 }
 0x115   :  { %v1614_v41 = vadd.f32 %v1613_v40, %v1601_v39 }
 0x116   :  { %v1626_v42 = vpop.f32.mrf.mxu1  ;;  %2113 = vmatpush.bf16.msrb.mxu2 %v3416_v61 }
 0x117   :  { %2088 = vmatmul.bf16.vlgmr.msrb.gmra.mxu0 %v1816_v38  ;;  %v1627_v45 = vadd.f32 %v1626_v42, %v1614_v41  ;;  %2126 = vmatpush.bf16.msrb.mxu3 %v3424_v24 }
 0x119   :  { %v1813_v46 = vmax.f32 %v1627_v45, 0.0 }
 0x11b   :  { %v1817_v49 = vpack.c.bf16 %v1813_v46, %v1813_v46 }
 0x11c   :  { %v1615_v53 = vpop.f32.mrf.mxu0 }
 0x11d   :  { %v1639_v50 = vpop.f32.mrf.mxu2  ;;  %v1652_v52 = vpop.f32.mrf.mxu3  ;;  %2101 = vmatmul.bf16.vlgmr.msrb.gmra.mxu1 %v1817_v49 }
 0x11e   :  { %v1628_v54 = vpop.f32.mrf.mxu1  ;;  %v1640_v2 = vadd.f32 %v1639_v50, %v322_v62 }
 0x120   :  { %v1653_v17 = vadd.f32 %v1652_v52, %v1640_v2 }
 0x125   :  { %v1641_v25 = vpop.f32.mrf.mxu2  ;;  %v1654_v57 = vpop.f32.mrf.mxu3 }
 0x134   :  { %v1665_v9 = vpop.f32.mrf.mxu0 }
 0x135   :  { %v1666_v11 = vadd.f32 %v1665_v9, %v1653_v17 }
 0x136   :  { %v1678_v60 = vpop.f32.mrf.mxu1 }
 0x137   :  { %v1679_v15 = vadd.f32 %v1678_v60, %v1666_v11 }
 0x13c   :  { %v1667_v3 = vpop.f32.mrf.mxu0 }
 0x13d   :  { %v1691_v63 = vpop.f32.mrf.mxu2  ;;  %v1704_v0 = vpop.f32.mrf.mxu3 }
 0x13e   :  { %v1680_v4 = vpop.f32.mrf.mxu1  ;;  %v1692_v12 = vadd.f32 %v1691_v63, %v1679_v15 }
 0x140   :  { %v1705_v37 = vadd.f32 %v1704_v0, %v1692_v12 }
 0x145   :  { %v1693_v6 = vpop.f32.mrf.mxu2  ;;  %v1706_v10 = vpop.f32.mrf.mxu3 }
 0x154   :  { %v1717_v13 = vpop.f32.mrf.mxu0 }
 0x155   :  { %v1718_v16 = vadd.f32 %v1717_v13, %v1705_v37 }
 0x156   :  { %v1730_v44 = vpop.f32.mrf.mxu1 }
 0x157   :  { %v1814_v18 = vmax.f32 %v1718_v16, 0.0  ;;  %v1731_v29 = vadd.f32 %v1730_v44, %v323_v28 }
 0x159   :  { %v1818_v19 = vpack.c.bf16 %v1814_v18, %v1814_v18 }
 0x15b   :  { %2114 = vmatmul.bf16.vlgmr.msrb.gmra.mxu2 %v1818_v19 }
 0x15c   :  { %v1719_v22 = vpop.f32.mrf.mxu0 }
 0x15d   :  { %v1743_v21 = vpop.f32.mrf.mxu2  ;;  %v1756_v47 = vpop.f32.mrf.mxu3 }
 0x15e   :  { %v1732_v26 = vpop.f32.mrf.mxu1  ;;  %v1744_v30 = vadd.f32 %v1743_v21, %v1731_v29 }
 0x160   :  { %v1757_v32 = vadd.f32 %v1756_v47, %v1744_v30 }
 0x165   :  { %v1745_v58 = vpop.f32.mrf.mxu2  ;;  %v1758_v27 = vpop.f32.mrf.mxu3 }
 0x174   :  { %v1769_v34 = vpop.f32.mrf.mxu0 }
 0x175   :  { %v1770_v35 = vadd.f32 %v1769_v34, %v1757_v32 }
 0x176   :  { %v1782_v59 = vpop.f32.mrf.mxu1 }
 0x177   :  { %v1783_v38 = vadd.f32 %v1782_v59, %v1770_v35 }
 0x17c   :  { %v1795_v23 = vpop.f32.mrf.mxu2  ;;  %v1771_v14 = vpop.f32.mrf.mxu0 }
 0x17d   :  { %v1796_v39 = vadd.f32 %v1795_v23, %v1783_v38  ;;  %v1808_v40 = vpop.f32.mrf.mxu3 }
 0x17e   :  { %v1784_v41 = vpop.f32.mrf.mxu1 }
 0x17f   :  { %v1809_v42 = vadd.f32 %v1808_v40, %v1796_v39 }
 0x181   :  { %v1815_v45 = vmax.f32 %v1809_v42, 0.0 }
 0x183   :  { %v1819_v46 = vpack.c.bf16 %v1815_v45, %v1815_v45 }
 0x184   :  { %v1797_v48 = vpop.f32.mrf.mxu2 }
 0x185   :  { %v1810_v49 = vpop.f32.mrf.mxu3  ;;  %2127 = vmatmul.bf16.vlgmr.msrb.gmra.mxu3 %v1819_v46 }
 0x194   :  { %v2089_v50 = vpop.f32.mrf.mxu0 }
 0x195   :  { %v2090_v52 = vadd.f32 %v3441_v51, %v2089_v50 }
 0x19a   :  { %v2102_v53 = vpop.f32.mrf.mxu1 }
 0x19b   :  { %v2103_v54 = vadd.f32 %v2102_v53, %v2090_v52 }
 0x19c   :  { %v2091_v43 = vpop.f32.mrf.mxu0 }
 0x1a2   :  { %v2104_v55 = vpop.f32.mrf.mxu1 }
 0x1de   :  { %v2115_v25 = vpop.f32.mrf.mxu2 }
 0x1df   :  { %v2116_v57 = vadd.f32 %v2115_v25, %v2103_v54 }
 0x1e6   :  { %v2117_v56 = vpop.f32.mrf.mxu2 }
 0x208   :  { %v2128_v8 = vpop.f32.mrf.mxu3 }
 0x209   :  { %v2129_v9 = vadd.f32 %v2128_v8, %v2116_v57 }
 0x20b   :  { %2132 = vst [vmem:[#allocation10] sm:$0xff] %v2129_v9 }
 0x20c   :  { %2143 = dma.vmem_to_hbm [thread:$0]  %s2139_s16, 128, %s2141_s19, [#allocation4]  }
 0x210   :  { %v2130_v60 = vpop.f32.mrf.mxu3 }
 0x211   :  { %3568 = dma.done.wait [#allocation4], 128  }
 0x212   :  { %3569 = vsyncadd [#allocation4], 4294967168 }
 0x213   :  { %2148 = vsyncpa [#allocation3], 1 }
 0x214   :  { %2149 = vsyncpa [#allocation6], 1 }
 0x215   :  { %2150 = vsyncpa [#allocation9], 1 }
 0x216   :  { %2151 = vsyncpa [#allocation4], 1 }

</bundles_post_ra>
